<compile_context>
chip_gen: v5e
topology: v5e:2x2
jax: 0.10.0
libtpu: 0.0.40
codegen_flags: <defaults>
</compile_context>

<pallas_src>
import jax
import jax.numpy as jnp
from jax import lax
from jax.experimental import pallas as pl
from jax.experimental.pallas import tpu as pltpu


def tiny_nerf_kernel(x_ref,
                     w0_ref, b0_ref,
                     w1_ref, b1_ref,
                     w2_ref, b2_ref,
                     w3_ref, b3_ref,
                     o_ref):
    """One batch tile: (linear + relu) x3, then linear to out_dim (transposed)."""
    h = x_ref[...]                                           # (tile_n, pos_dim) bf16

    h = jnp.dot(h, w0_ref[...], preferred_element_type=jnp.float32) + b0_ref[...]
    h = jnp.maximum(h, 0.0).astype(jnp.bfloat16)

    h = jnp.dot(h, w1_ref[...], preferred_element_type=jnp.float32) + b1_ref[...]
    h = jnp.maximum(h, 0.0).astype(jnp.bfloat16)

    h = jnp.dot(h, w2_ref[...], preferred_element_type=jnp.float32) + b2_ref[...]
    h = jnp.maximum(h, 0.0).astype(jnp.bfloat16)

    # Last layer: w3 is (out_dim, fc_dim); contract both operands on their
    # feature axis so the result comes out already transposed as
    # (out_dim, tile_n) -> lane-dense store (tile_n on the 128-lane axis).
    out_t = lax.dot_general(
        w3_ref[...], h,
        dimension_numbers=(((1,), (1,)), ((), ())),
        preferred_element_type=jnp.float32,
    )                                                        # (out_dim, tile_n) f32
    o_ref[...] = (out_t + b3_ref[...]).astype(o_ref.dtype)


def init_tiny_nerf_params(key, pos_dim, fc_dim=128, out_dim=4):
    """nn.Linear-style U(-1/sqrt(in), 1/sqrt(in)) init; float32 master copy.

    Weights stored (in, out) so x @ W + b == PyTorch x @ W_pt.T + b.
    """
    dims = [(pos_dim, fc_dim), (fc_dim, fc_dim), (fc_dim, fc_dim), (fc_dim, out_dim)]
    params = {}
    for li, (din, dout) in enumerate(dims):
        key, kw, kb = jax.random.split(key, 3)
        bound = 1.0 / float(din) ** 0.5
        w_pt = jax.random.uniform(kw, (dout, din), jnp.float32, -bound, bound)
        b = jax.random.uniform(kb, (dout,), jnp.float32, -bound, bound)
        params[f"w{li}"] = jnp.transpose(w_pt)   # (in, out)
        params[f"b{li}"] = b.reshape(1, dout)    # (1, out)
    return params


def prepare_tiny_nerf_params(params):
    """One-time conversion of f32 master params to the kernel layout:
    bf16 weights, w3 in (out, in) layout, b3 as an (out, 1) column, f32 biases."""
    return {
        "w0": params["w0"].astype(jnp.bfloat16),
        "w1": params["w1"].astype(jnp.bfloat16),
        "w2": params["w2"].astype(jnp.bfloat16),
        "w3": jnp.transpose(params["w3"]).astype(jnp.bfloat16),   # (out, in)
        "b0": params["b0"],
        "b1": params["b1"],
        "b2": params["b2"],
        "b3": jnp.transpose(params["b3"]),                         # (out, 1)
    }


def tiny_nerf_forward(x, kparams, *, tile_n=512):
    """TinyNeRF forward via the Pallas kernel.

    Args:
      x: (N, pos_dim) float32 (or bf16) positional-encoded points, any N.
      kparams: output of prepare_tiny_nerf_params.
      tile_n: batch tile, multiple of 128. Sweep 512-2048; keep >= 8 grid
        steps on v7x so both TensorCores get work.
    Returns:
      (N, 4) float32 (density + RGB), matching the PyTorch module's output.
    """
    n, pos_dim = x.shape
    out_dim = kparams["w3"].shape[0]

    # Keep tile_n a multiple of 128 (block-shape rule) and don't tile past N.
    tile_n = max(128, (tile_n // 128) * 128)
    tile_n = min(tile_n, pl.cdiv(n, 128) * 128)
    n_pad = pl.cdiv(n, tile_n) * tile_n
    grid = (n_pad // tile_n,)

    # bf16 matmul inputs (ideally the upstream PE stage emits bf16 directly).
    xb = x.astype(jnp.bfloat16)
    if n_pad != n:
        xb = jnp.pad(xb, ((0, n_pad - n), (0, 0)))

    # Weights/biases: one full block, same for every grid step (not re-DMA'd).
    # The default double-buffered VMEM copy of these ~150 KB is accepted.
    def resident(arr):
        return pl.BlockSpec(arr.shape, lambda i: (0, 0))

    in_specs = [
        pl.BlockSpec((tile_n, pos_dim), lambda i: (i, 0)),      # x tile
        resident(kparams["w0"]), resident(kparams["b0"]),
        resident(kparams["w1"]), resident(kparams["b1"]),
        resident(kparams["w2"]), resident(kparams["b2"]),
        resident(kparams["w3"]), resident(kparams["b3"]),
    ]
    # Lane-dense output: the kernel writes the transposed (out_dim, n_pad) slab.
    out_specs = pl.BlockSpec((out_dim, tile_n), lambda i: (0, i))

    out_t = pl.pallas_call(
        tiny_nerf_kernel,
        out_shape=jax.ShapeDtypeStruct((out_dim, n_pad), jnp.float32),
        grid_spec=pltpu.PrefetchScalarGridSpec(
            num_scalar_prefetch=0,
            grid=grid,
            in_specs=in_specs,
            out_specs=out_specs,
        ),
        compiler_params=pltpu.CompilerParams(
            dimension_semantics=("parallel",),
            # Explicit budget: double-buffered x tile + resident weights +
            # a few (tile_n, fc_dim) f32 intermediates; safe on v5e/v6e/v7x.
            vmem_limit_bytes=32 * 1024 * 1024,
        ),
    )(xb,
      kparams["w0"], kparams["b0"],
      kparams["w1"], kparams["b1"],
      kparams["w2"], kparams["b2"],
      kparams["w3"], kparams["b3"])

    return jnp.transpose(out_t)[:n]   # back to (N, 4), drop row padding


def tiny_nerf_reference_f32(x, params):
    """Pure-f32 reference (the PyTorch module's math)."""
    h = x
    for li in range(3):
        h = jnp.maximum(h @ params[f"w{li}"] + params[f"b{li}"], 0.0)
    return h @ params["w3"] + params["b3"]


def tiny_nerf_reference_bf16(x, params):
    """Reference that mimics the kernel's numerics (bf16 matmul inputs, f32 acc)."""
    h = x.astype(jnp.bfloat16)
    for li in range(3):
        w = params[f"w{li}"].astype(jnp.bfloat16)
        h = jnp.dot(h, w, preferred_element_type=jnp.float32) + params[f"b{li}"]
        h = jnp.maximum(h, 0.0).astype(jnp.bfloat16)
    w3 = params["w3"].astype(jnp.bfloat16)
    return jnp.dot(h, w3, preferred_element_type=jnp.float32) + params["b3"]


if __name__ == "__main__":
    key = jax.random.PRNGKey(0)
    k_params, k_x = jax.random.split(key)

    N = 4096        # sampled points; 8 grid steps at tile_n=512 (feeds both v7x TCs)
    POS_DIM = 32    # positional-encoding width
    FC_DIM = 128    # hidden width (module default; fills the 128 lanes / v5e MXU)

    params = init_tiny_nerf_params(k_params, POS_DIM, FC_DIM)
    kparams = prepare_tiny_nerf_params(params)
    x = jax.random.normal(k_x, (N, POS_DIM), jnp.float32)

    fwd = jax.jit(tiny_nerf_forward, static_argnames=("tile_n",))
    out = jax.block_until_ready(fwd(x, kparams, tile_n=512))

    assert out.shape == (N, 4)
    # Tight check against a reference with the same bf16/f32 numerics...
    ref_bf16 = tiny_nerf_reference_bf16(x, params)
    assert jnp.allclose(out, ref_bf16, atol=1e-2, rtol=1e-2)
    # ...and a loose sanity check against the pure-f32 PyTorch-equivalent math.
    ref_f32 = tiny_nerf_reference_f32(x, params)
    assert jnp.allclose(out, ref_f32, atol=1e-1, rtol=1e-1)

    print("KERNEL_OK")
</pallas_src>

<mosaic_0001>
module attributes {stable_mosaic.version = 11 : i64} {
  func.func @tiny_nerf_kernel(%arg0: i32, %arg1: memref<512x32xbf16, #tpu.memory_space<vmem>>, %arg2: memref<32x128xbf16, #tpu.memory_space<vmem>>, %arg3: memref<1x128xf32, #tpu.memory_space<vmem>>, %arg4: memref<128x128xbf16, #tpu.memory_space<vmem>>, %arg5: memref<1x128xf32, #tpu.memory_space<vmem>>, %arg6: memref<128x128xbf16, #tpu.memory_space<vmem>>, %arg7: memref<1x128xf32, #tpu.memory_space<vmem>>, %arg8: memref<4x128xbf16, #tpu.memory_space<vmem>>, %arg9: memref<4x1xf32, #tpu.memory_space<vmem>>, %arg10: memref<4x512xf32, #tpu.memory_space<vmem>>) attributes {dimension_semantics = [#tpu.dimension_semantics<parallel>], iteration_bounds = array<i64: 8>, scalar_prefetch = 0 : i64, scratch_operands = 0 : i64, tpu.core_type = #tpu.core_type<tc>, window_params = [{transform_indices = @transform_0, window_bounds = array<i64: 512, 32>}, {pipeline_mode = #tpu.pipeline_mode<synchronous>, transform_indices = @transform_1, window_bounds = array<i64: 32, 128>}, {pipeline_mode = #tpu.pipeline_mode<synchronous>, transform_indices = @transform_2, window_bounds = array<i64: 1, 128>}, {pipeline_mode = #tpu.pipeline_mode<synchronous>, transform_indices = @transform_3, window_bounds = array<i64: 128, 128>}, {pipeline_mode = #tpu.pipeline_mode<synchronous>, transform_indices = @transform_4, window_bounds = array<i64: 1, 128>}, {pipeline_mode = #tpu.pipeline_mode<synchronous>, transform_indices = @transform_5, window_bounds = array<i64: 128, 128>}, {pipeline_mode = #tpu.pipeline_mode<synchronous>, transform_indices = @transform_6, window_bounds = array<i64: 1, 128>}, {pipeline_mode = #tpu.pipeline_mode<synchronous>, transform_indices = @transform_7, window_bounds = array<i64: 4, 128>}, {pipeline_mode = #tpu.pipeline_mode<synchronous>, transform_indices = @transform_8, window_bounds = array<i64: 4, 1>}, {transform_indices = @transform_9, window_bounds = array<i64: 4, 512>}]} {
    %c0 = arith.constant 0 : index
    %c0_0 = arith.constant 0 : index
    %0 = vector.load %arg1[%c0, %c0_0] : memref<512x32xbf16, #tpu.memory_space<vmem>>, vector<512x32xbf16>
    %c0_1 = arith.constant 0 : index
    %c0_2 = arith.constant 0 : index
    %1 = vector.load %arg2[%c0_1, %c0_2] : memref<32x128xbf16, #tpu.memory_space<vmem>>, vector<32x128xbf16>
    %cst = arith.constant dense<0.000000e+00> : vector<512x128xf32>
    %2 = tpu.matmul %0, %1, %cst {dimension_numbers = #tpu.dot_dimension_numbers<[1], [0], [0], [1], [0, 0, 1, 1], [], []>} : vector<512x32xbf16>, vector<32x128xbf16>, vector<512x128xf32> -> vector<512x128xf32>
    %c0_3 = arith.constant 0 : index
    %c0_4 = arith.constant 0 : index
    %3 = vector.load %arg3[%c0_3, %c0_4] : memref<1x128xf32, #tpu.memory_space<vmem>>, vector<1x128xf32>
    %4 = vector.broadcast %3 : vector<1x128xf32> to vector<512x128xf32>
    %5 = arith.addf %2, %4 : vector<512x128xf32>
    %cst_5 = arith.constant 0.000000e+00 : f32
    %6 = vector.broadcast %cst_5 : f32 to vector<512x128xf32>
    %7 = arith.maximumf %5, %6 : vector<512x128xf32>
    %8 = arith.truncf %7 : vector<512x128xf32> to vector<512x128xbf16>
    %c0_6 = arith.constant 0 : index
    %c0_7 = arith.constant 0 : index
    %9 = vector.load %arg4[%c0_6, %c0_7] : memref<128x128xbf16, #tpu.memory_space<vmem>>, vector<128x128xbf16>
    %cst_8 = arith.constant dense<0.000000e+00> : vector<512x128xf32>
    %10 = tpu.matmul %8, %9, %cst_8 {dimension_numbers = #tpu.dot_dimension_numbers<[1], [0], [0], [1], [0, 0, 1, 1], [], []>} : vector<512x128xbf16>, vector<128x128xbf16>, vector<512x128xf32> -> vector<512x128xf32>
    %c0_9 = arith.constant 0 : index
    %c0_10 = arith.constant 0 : index
    %11 = vector.load %arg5[%c0_9, %c0_10] : memref<1x128xf32, #tpu.memory_space<vmem>>, vector<1x128xf32>
    %12 = vector.broadcast %11 : vector<1x128xf32> to vector<512x128xf32>
    %13 = arith.addf %10, %12 : vector<512x128xf32>
    %cst_11 = arith.constant 0.000000e+00 : f32
    %14 = vector.broadcast %cst_11 : f32 to vector<512x128xf32>
    %15 = arith.maximumf %13, %14 : vector<512x128xf32>
    %16 = arith.truncf %15 : vector<512x128xf32> to vector<512x128xbf16>
    %c0_12 = arith.constant 0 : index
    %c0_13 = arith.constant 0 : index
    %17 = vector.load %arg6[%c0_12, %c0_13] : memref<128x128xbf16, #tpu.memory_space<vmem>>, vector<128x128xbf16>
    %cst_14 = arith.constant dense<0.000000e+00> : vector<512x128xf32>
    %18 = tpu.matmul %16, %17, %cst_14 {dimension_numbers = #tpu.dot_dimension_numbers<[1], [0], [0], [1], [0, 0, 1, 1], [], []>} : vector<512x128xbf16>, vector<128x128xbf16>, vector<512x128xf32> -> vector<512x128xf32>
    %c0_15 = arith.constant 0 : index
    %c0_16 = arith.constant 0 : index
    %19 = vector.load %arg7[%c0_15, %c0_16] : memref<1x128xf32, #tpu.memory_space<vmem>>, vector<1x128xf32>
    %20 = vector.broadcast %19 : vector<1x128xf32> to vector<512x128xf32>
    %21 = arith.addf %18, %20 : vector<512x128xf32>
    %cst_17 = arith.constant 0.000000e+00 : f32
    %22 = vector.broadcast %cst_17 : f32 to vector<512x128xf32>
    %23 = arith.maximumf %21, %22 : vector<512x128xf32>
    %24 = arith.truncf %23 : vector<512x128xf32> to vector<512x128xbf16>
    %c0_18 = arith.constant 0 : index
    %c0_19 = arith.constant 0 : index
    %25 = vector.load %arg8[%c0_18, %c0_19] : memref<4x128xbf16, #tpu.memory_space<vmem>>, vector<4x128xbf16>
    %cst_20 = arith.constant dense<0.000000e+00> : vector<4x512xf32>
    %26 = tpu.matmul %25, %24, %cst_20 {dimension_numbers = #tpu.dot_dimension_numbers<[1], [1], [0], [0], [0, 0, 1, 0], [], []>} : vector<4x128xbf16>, vector<512x128xbf16>, vector<4x512xf32> -> vector<4x512xf32>
    %c0_21 = arith.constant 0 : index
    %c0_22 = arith.constant 0 : index
    %27 = vector.load %arg9[%c0_21, %c0_22] : memref<4x1xf32, #tpu.memory_space<vmem>>, vector<4x1xf32>
    %28 = vector.broadcast %27 : vector<4x1xf32> to vector<4x512xf32>
    %29 = arith.addf %26, %28 : vector<4x512xf32>
    %c0_23 = arith.constant 0 : index
    %c0_24 = arith.constant 0 : index
    %30 = vector.load %arg10[%c0_23, %c0_24] : memref<4x512xf32, #tpu.memory_space<vmem>>, vector<4x512xf32>
    tpu.vector_store %arg10[%c0_23, %c0_24], %29 {strides = array<i32>} : memref<4x512xf32, #tpu.memory_space<vmem>>, vector<4x512xf32>,
    return
  }
  func.func @transform_0(%arg0: i32) -> (i32, i32) {
    %c0_i32 = arith.constant 0 : i32
    %c0_i32_0 = arith.constant 0 : i32
    return %arg0, %c0_i32 : i32, i32
  }
  func.func @transform_1(%arg0: i32) -> (i32, i32) {
    %c0_i32 = arith.constant 0 : i32
    %c0_i32_0 = arith.constant 0 : i32
    %c0_i32_1 = arith.constant 0 : i32
    return %c0_i32, %c0_i32_0 : i32, i32
  }
  func.func @transform_2(%arg0: i32) -> (i32, i32) {
    %c0_i32 = arith.constant 0 : i32
    %c0_i32_0 = arith.constant 0 : i32
    %c0_i32_1 = arith.constant 0 : i32
    return %c0_i32, %c0_i32_0 : i32, i32
  }
  func.func @transform_3(%arg0: i32) -> (i32, i32) {
    %c0_i32 = arith.constant 0 : i32
    %c0_i32_0 = arith.constant 0 : i32
    %c0_i32_1 = arith.constant 0 : i32
    return %c0_i32, %c0_i32_0 : i32, i32
  }
  func.func @transform_4(%arg0: i32) -> (i32, i32) {
    %c0_i32 = arith.constant 0 : i32
    %c0_i32_0 = arith.constant 0 : i32
    %c0_i32_1 = arith.constant 0 : i32
    return %c0_i32, %c0_i32_0 : i32, i32
  }
  func.func @transform_5(%arg0: i32) -> (i32, i32) {
    %c0_i32 = arith.constant 0 : i32
    %c0_i32_0 = arith.constant 0 : i32
    %c0_i32_1 = arith.constant 0 : i32
    return %c0_i32, %c0_i32_0 : i32, i32
  }
  func.func @transform_6(%arg0: i32) -> (i32, i32) {
    %c0_i32 = arith.constant 0 : i32
    %c0_i32_0 = arith.constant 0 : i32
    %c0_i32_1 = arith.constant 0 : i32
    return %c0_i32, %c0_i32_0 : i32, i32
  }
  func.func @transform_7(%arg0: i32) -> (i32, i32) {
    %c0_i32 = arith.constant 0 : i32
    %c0_i32_0 = arith.constant 0 : i32
    %c0_i32_1 = arith.constant 0 : i32
    return %c0_i32, %c0_i32_0 : i32, i32
  }
  func.func @transform_8(%arg0: i32) -> (i32, i32) {
    %c0_i32 = arith.constant 0 : i32
    %c0_i32_0 = arith.constant 0 : i32
    %c0_i32_1 = arith.constant 0 : i32
    return %c0_i32, %c0_i32_0 : i32, i32
  }
  func.func @transform_9(%arg0: i32) -> (i32, i32) {
    %c0_i32 = arith.constant 0 : i32
    %c0_i32_0 = arith.constant 0 : i32
    return %c0_i32, %arg0 : i32, i32
  }
}

</mosaic_0001>

<bundles_post_ra>
// kernel: tiny_nerf_forward.1
= control target key start
LH: loop header
LB: loop body
LE: loop exit
PB: predicated region body
PF: predicated region fallthrough
CT: control target
= control target key end

     0   :  { %14 = vsyncpa [#allocation3], 0  ;;  %s2763_s0 = inlined_call_operand.vmem [shape: bf16[4096,32], index: 0, kind: input, shape index: {}]   ;;  %s2764_s1 = inlined_call_operand.vmem [shape: bf16[32,128], index: 1, kind: input, shape index: {}]   ;;  %s2765_s2 = inlined_call_operand.vmem [shape: f32[1,128], index: 2, kind: input, shape index: {}]   ;;  %s2766_s3 = inlined_call_operand.vmem [shape: bf16[128,128], index: 3, kind: input, shape index: {}]   ;;  %s2767_s4 = inlined_call_operand.vmem [shape: f32[1,128], index: 4, kind: input, shape index: {}]   ;;  %s2768_s5 = inlined_call_operand.vmem [shape: bf16[128,128], index: 5, kind: input, shape index: {}]   ;;  %s2769_s6 = inlined_call_operand.vmem [shape: f32[1,128], index: 6, kind: input, shape index: {}]   ;;  %s2770_s7 = inlined_call_operand.vmem [shape: bf16[4,128], index: 7, kind: input, shape index: {}]   ;;  %s2771_s8 = inlined_call_operand.vmem [shape: f32[4,1], index: 8, kind: input, shape index: {}]   ;;  %s2772_s9 = inlined_call_operand.hbm [shape: f32[4,4096], index: 9, kind: output, shape index: {}]  }
   0x1   :  { %16 = vsyncpa [#allocation3 + $0x1], 0  ;;  %s2230_s30 = smov 0   ;;  %s2232_s10 = smov 0  }
   0x2   :  { %s2234_s11 = smov 0   ;;  %s2236_s12 = smov 0  }
   0x3 LB: > { %s2251_s13 = sadd.s32 4294967295, %s2177_s12   ;;  %s1755_s14 = sadd.s32 4294967294, %s2177_s12   ;;  %s2177_s12 = sphi %s2236_s12, %s2778_s12   ;;  %s2173_s11 = sphi %s2234_s11, %s2777_s11   ;;  %s2169_s10 = sphi %s2232_s10, %s2776_s10   ;;  %s2165_s30 = sphi %s2230_s30, %s2775_s30  }
   0x4   : > { %s2255_s15 = sadd.s32 1, %s2177_s12   ;;  %s223_s16 = sadd.s32 1, %s2173_s11 }
   0x5   : > { %s220_s17 = ssub.s32 %s2177_s12, %s2255_s15  ;;  %p233_p0 = scmp.ne.s32.totalorder %s2173_s11, %s2169_s10 }
   0x6   : > { %p221_p1 = scmp.eq.s32.totalorder %s220_s17, 0  ;;  %p234_p2 = scmp.eq.s32.totalorder %s2251_s13, 7 }
   0x7   : > { %p239_p3 = scmp.ne.s32.totalorder %s2169_s10, %s2165_s30  ;;  %p240_p4 = scmp.eq.s32.totalorder %s1755_s14, 7 }
   0x8   : > { %s2266_s18 = scalar_select %p221_p1, %s2173_s11, %s223_s16  }
   0x9   : > { %p2268_p5 = por %p234_p2, %p233_p0  ;;  %p2272_p6 = por %p240_p4, %p239_p3 }
   0xa   : > { %p1758_p7 = scmp.ge.s32.totalorder %s2177_s12, 1  ;;  %p291_p8 = scmp.lt.s32.totalorder %s2177_s12, 9 }
   0xc   : > { %p292_p9 = pnand %p1758_p7, %p291_p8 }
   0xd   : > { %s1760_s23 = sshll.u32 (!%p292_p9), %s2251_s13, 6  ;;  %s324_s21 = sand.u32 (!%p292_p9), 1, %s2169_s10  }
   0xe   : > { %295 = sbr.rel (%p292_p9) target bundleno = 1158 (0x486), region = 56  ;;  %p328_p10 = scmp.lt.s32.totalorder (!%p292_p9), %s1760_s23, 511 }
   0xf   : > { %s1759_s22 = sshll.u32 (!%p292_p9), %s324_s21, 4  ;;  %s1680_s14 = scalar_lea.sflag (!%p292_p9), [#allocation3], %s324_s21 }
  0x13   : > { %v2032_v0 = vld [vmem:[%s2764_s1 + $0x8] sm:$0xff]  ;;  %v2031_v1 = vld [vmem:[%s2764_s1] sm:$0xff]  ;;  %s2780_s23 = smov (!%p328_p10, %s1760_s23), 511  ;;  %vm579_vm0 = vcmask 261120   ;;  %v2040_v7 = vld [vmem:[%s2766_s3 + $0x38] sm:$0xff]  ;;  %vm1672_vm1 = vcmask 1043456  }
  0x14   : > { %682 = vmatpush.bf16.msra.mxu0 %v2032_v0  ;;  %2050 = vmatpush.bf16.msra.mxu3 %v2032_v0  ;;  %s1761_s26 = sshll.u32 %s2780_s23, 2  ;;  %v2039_v9 = vld [vmem:[%s2766_s3 + $0x30] sm:$0xff]  ;;  %v2038_v10 = vld [vmem:[%s2766_s3 + $0x28] sm:$0xff]  ;;  %v2037_v11 = vld [vmem:[%s2766_s3 + $0x20] sm:$0xff]  ;;  %s2049_s23 = sshll.u32 %s2251_s13, 4 }
  0x15   : > { %s2288_s29 = scalar_lea.vmem %s2763_s0, %s1761_s26  ;;  %1009 = vmatpush.bf16.msra.mxu1 %v2040_v7  ;;  %v2036_v12 = vld [vmem:[%s2766_s3 + $0x18] sm:$0xff]  ;;  %v2035_v14 = vld [vmem:[%s2766_s3 + $0x10] sm:$0xff]  ;;  %v2034_v15 = vld [vmem:[%s2766_s3 + $0x8] sm:$0xff]  ;;  %s1691_s26 = scalar_lea.hbm %s2772_s9, %s2049_s23 }
  0x16   : > { %v1999_v2 = vld [vmem:[%s2288_s29] sm:$0xff]  ;;  %v2000_v3 = vld [vmem:[%s2288_s29 + $0x8] sm:$0xff]  ;;  %v2001_v4 = vld [vmem:[%s2288_s29 + $0x10] sm:$0xff]  ;;  %s1695_s28 = sshll.u32 %s1691_s26, 4  ;;  %s2135_s23 = scalar_lea.hbm %s2772_s9, 128  ;;  %s1696_s28 = int_to_ptr.hbm [resolvable:$true] %s1695_s28 }
  0x17   : > { %v2002_v5 = vld [vmem:[%s2288_s29 + $0x18] sm:$0xff]  ;;  %v2003_v6 = vld [vmem:[%s2288_s29 + $0x20] sm:$0xff]  ;;  %v2004_v8 = vld [vmem:[%s2288_s29 + $0x28] sm:$0xff]  ;;  %s2129_s16 = sshra.s32 %s1696_s28, 4  ;;  %s2130_s16 = int_to_ptr.hbm [resolvable:$true] %s2129_s16 }
  0x18   : > { %683 = vmatpush.bf16.msra.mxu0 %v2031_v1  ;;  %2051 = vmatpush.bf16.msra.mxu3 %v2031_v1  ;;  %v2005_v13 = vld [vmem:[%s2288_s29 + $0x30] sm:$0xff]  ;;  %v2033_v16 = vld [vmem:[%s2766_s3] sm:$0xff]  ;;  %v2006_v17 = vld [vmem:[%s2288_s29 + $0x38] sm:$0xff]  ;;  %s2131_s13 = scalar_lea.hbm %s2130_s16, 16  ;;  %p2136_p0 = scmp.lt.s32.totalorder %s2130_s16, %s2772_s9 }
  0x19   : > { %1010 = vmatpush.bf16.msra.mxu1 %v2039_v9  ;;  %v2007_v18 = vld [vmem:[%s2288_s29 + $0x40] sm:$0xff]  ;;  %v2008_v27 = vld [vmem:[%s2288_s29 + $0x48] sm:$0xff]  ;;  %v2009_v35 = vld [vmem:[%s2288_s29 + $0x50] sm:$0xff]  ;;  %p2132_p11 = scmp.ne.s32.totalorder %s2130_s16, %s2131_s13  ;;  %p2137_p1 = scmp.lt.s32.totalorder %s2135_s23, %s2131_s13 }
  0x1a   : > { %v2334_v20 = vld [vmem:[%s2765_s2] ss:$0 sm:$0xff]  ;;  %v2010_v43 = vld [vmem:[%s2288_s29 + $0x58] sm:$0xff]  ;;  %v2012_v59 = vld [vmem:[%s2288_s29 + $0x68] sm:$0xff] }
  0x1b   : > { %1898 = vmatmul.msk.bf16.vlgmr.msra.gmra.mxu0 %vm579_vm0, %v1999_v2  ;;  %v2011_v51 = vld [vmem:[%s2288_s29 + $0x60] sm:$0xff]  ;;  %v2362_v0 = vld [vmem:[%s2768_s5 + $0x38] sm:$0xff]  ;;  %p2133_p12 = pnand %p2132_p11, %p2268_p5  ;;  %p2138_p2 = por %p2137_p1, %p2136_p0 }
  0x1c   : > { %2052 = vmatpush.bf16.msrb.mxu3 %v2040_v7  ;;  %1342 = vmatpush.bf16.msra.mxu2 %v2362_v0  ;;  %v2375_v7 = vld [vmem:[%s2768_s5 + $0x28] sm:$0xff] }
  0x1d   : > { %1011 = vmatpush.bf16.msra.mxu1 %v2038_v10  ;;  %p2134_p13 = pneg %p2133_p12 }
  0x1f   : > { %p2139_p3 = pnand %p2138_p2, %p2134_p13 }
  0x20   : > { %2053 = vmatpush.bf16.msrb.mxu3 %v2039_v9 }
  0x21   : > { %1012 = vmatpush.bf16.msra.mxu1 %v2037_v11 }
  0x24   : > { %2054 = vmatpush.bf16.msrb.mxu3 %v2038_v10 }
  0x25   : > { %1013 = vmatpush.bf16.msra.mxu1 %v2036_v12 }
  0x28   : > { %2055 = vmatpush.bf16.msrb.mxu3 %v2037_v11 }
  0x29   : > { %1014 = vmatpush.bf16.msra.mxu1 %v2035_v14 }
  0x2b   : > { %1899 = vmatmul.msk.bf16.gmra.mxu0 %vm579_vm0, %v2000_v3 }
  0x2c   : > { %2056 = vmatpush.bf16.msrb.mxu3 %v2036_v12  ;;  %v2390_v12 = vld [vmem:[%s2768_s5 + $0x18] sm:$0xff] }
  0x2d   : > { %1015 = vmatpush.bf16.msra.mxu1 %v2034_v15 }
  0x30   : > { %2057 = vmatpush.bf16.msrb.mxu3 %v2035_v14 }
  0x31   : > { %1016 = vmatpush.bf16.msra.mxu1 %v2033_v16 }
  0x34   : > { %2058 = vmatpush.bf16.msrb.mxu3 %v2034_v15 }
  0x38   : > { %2059 = vmatpush.bf16.msrb.mxu3 %v2033_v16  ;;  %v2396_v16 = vld [vmem:[%s2768_s5 + $0x10] sm:$0xff] }
  0x3b   : > { %1900 = vmatmul.msk.bf16.gmra.mxu0 %vm579_vm0, %v2001_v4  ;;  %v2368_v4 = vld [vmem:[%s2768_s5 + $0x30] sm:$0xff] }
  0x3c   : > { %1343 = vmatpush.bf16.msra.mxu2 %v2368_v4 }
  0x40   : > { %1344 = vmatpush.bf16.msra.mxu2 %v2375_v7 }
  0x4b   : > { %1901 = vmatmul.msk.bf16.gmra.mxu0 %vm579_vm0, %v2002_v5  ;;  %v2013_v5 = vld [vmem:[%s2288_s29 + $0x70] sm:$0xff] }
  0x5b   : > { %1902 = vmatmul.msk.bf16.gmra.mxu0 %vm579_vm0, %v2003_v6 }
  0x6b   : > { %1903 = vmatmul.msk.bf16.gmra.mxu0 %vm579_vm0, %v2004_v8  ;;  %v2382_v8 = vld [vmem:[%s2768_s5 + $0x20] sm:$0xff] }
  0x6c   : > { %1345 = vmatpush.bf16.msra.mxu2 %v2382_v8 }
  0x70   : > { %1346 = vmatpush.bf16.msra.mxu2 %v2390_v12 }
  0x74   : > { %1347 = vmatpush.bf16.msra.mxu2 %v2396_v16 }
  0x7b   : > { %1904 = vmatmul.msk.bf16.gmra.mxu0 %vm579_vm0, %v2005_v13 }
  0x8b   : > { %1905 = vmatmul.msk.bf16.gmra.mxu0 %vm579_vm0, %v2006_v17  ;;  %v2014_v17 = vld [vmem:[%s2288_s29 + $0x78] sm:$0xff] }
  0x98   : > { %v685_v19 = vpop.f32.mrf.mxu0 }
  0x99   : > { %v686_v21 = vadd.f32 %v2334_v20, %v685_v19  ;;  %v2403_v19 = vld [vmem:[%s2768_s5 + $0x8] sm:$0xff] }
  0x9a   : > { %1348 = vmatpush.bf16.msra.mxu2 %v2403_v19 }
  0x9b   : > { %1906 = vmatmul.msk.bf16.gmra.mxu0 %vm579_vm0, %v2007_v18  ;;  %v845_v24 = vmax.f32 %v686_v21, 0.0  ;;  %v2410_v21 = vld [vmem:[%s2768_s5] sm:$0xff] }
  0x9e   : > { %1349 = vmatpush.bf16.msra.mxu2 %v2410_v21 }
  0xa0   : > { %v687_v22 = vpop.f32.mrf.mxu0 }
  0xa1   : > { %v688_v23 = vadd.f32 %v2334_v20, %v687_v22 }
  0xa3   : > { %v846_v25 = vmax.f32 %v688_v23, 0.0 }
  0xa5   : > { %v909_v26 = vpack.c.bf16 %v846_v25, %v845_v24 }
  0xa7   : > { %1017 = vmatmul.bf16.vlgmr.msra.gmra.mxu1 %v909_v26 }
  0xa8   : > { %v690_v28 = vpop.f32.mrf.mxu0 }
  0xa9   : > { %v691_v29 = vadd.f32 %v2334_v20, %v690_v28  ;;  %v2015_v28 = vld [vmem:[%s2288_s29 + $0x80] sm:$0xff] }
  0xab   : > { %1907 = vmatmul.msk.bf16.gmra.mxu0 %vm579_vm0, %v2008_v27  ;;  %v847_v32 = vmax.f32 %v691_v29, 0.0 }
  0xb0   : > { %v692_v30 = vpop.f32.mrf.mxu0 }
  0xb1   : > { %v693_v31 = vadd.f32 %v2334_v20, %v692_v30 }
  0xb3   : > { %v848_v33 = vmax.f32 %v693_v31, 0.0 }
  0xb5   : > { %v910_v34 = vpack.c.bf16 %v848_v33, %v847_v32 }
  0xb7   : > { %1022 = vmatmul.bf16.gmra.mxu1 %v910_v34 }
  0xb8   : > { %v695_v36 = vpop.f32.mrf.mxu0 }
  0xb9   : > { %v696_v37 = vadd.f32 %v2334_v20, %v695_v36 }
  0xbb   : > { %1908 = vmatmul.msk.bf16.gmra.mxu0 %vm579_vm0, %v2009_v35  ;;  %v849_v40 = vmax.f32 %v696_v37, 0.0  ;;  %v2422_v37 = vld [vmem:[%s2767_s4] ss:$0 sm:$0xff] }
  0xc0   : > { %v697_v38 = vpop.f32.mrf.mxu0 }
  0xc1   : > { %v698_v39 = vadd.f32 %v2334_v20, %v697_v38  ;;  %v2016_v38 = vld [vmem:[%s2288_s29 + $0x88] sm:$0xff] }
  0xc3   : > { %v850_v41 = vmax.f32 %v698_v39, 0.0 }
  0xc5   : > { %v911_v42 = vpack.c.bf16 %v850_v41, %v849_v40 }
  0xc7   : > { %1027 = vmatmul.bf16.gmra.mxu1 %v911_v42 }
  0xc8   : > { %v700_v44 = vpop.f32.mrf.mxu0 }
  0xc9   : > { %v701_v45 = vadd.f32 %v2334_v20, %v700_v44 }
  0xcb   : > { %1909 = vmatmul.msk.bf16.gmra.mxu0 %vm579_vm0, %v2010_v43  ;;  %v851_v48 = vmax.f32 %v701_v45, 0.0 }
  0xd0   : > { %v702_v46 = vpop.f32.mrf.mxu0 }
  0xd1   : > { %v703_v47 = vadd.f32 %v2334_v20, %v702_v46 }
  0xd3   : > { %v852_v49 = vmax.f32 %v703_v47, 0.0 }
  0xd5   : > { %v912_v50 = vpack.c.bf16 %v852_v49, %v851_v48 }
  0xd7   : > { %1032 = vmatmul.bf16.gmra.mxu1 %v912_v50 }
  0xd8   : > { %v705_v52 = vpop.f32.mrf.mxu0 }
  0xd9   : > { %v706_v53 = vadd.f32 %v2334_v20, %v705_v52 }
  0xdb   : > { %1910 = vmatmul.msk.bf16.gmra.mxu0 %vm579_vm0, %v2011_v51  ;;  %v853_v56 = vmax.f32 %v706_v53, 0.0  ;;  %v2017_v53 = vld [vmem:[%s2288_s29 + $0x90] sm:$0xff] }
  0xe0   : > { %v707_v54 = vpop.f32.mrf.mxu0 }
  0xe1   : > { %v708_v55 = vadd.f32 %v2334_v20, %v707_v54 }
  0xe3   : > { %v854_v57 = vmax.f32 %v708_v55, 0.0 }
  0xe5   : > { %v913_v58 = vpack.c.bf16 %v854_v57, %v853_v56 }
  0xe7   : > { %1037 = vmatmul.bf16.gmra.mxu1 %v913_v58 }
  0xe8   : > { %v710_v60 = vpop.f32.mrf.mxu0 }
  0xe9   : > { %v711_v61 = vadd.f32 %v2334_v20, %v710_v60 }
  0xeb   : > { %1911 = vmatmul.msk.bf16.gmra.mxu0 %vm579_vm0, %v2012_v59  ;;  %v855_v1 = vmax.f32 %v711_v61, 0.0 }
  0xf0   : > { %v712_v62 = vpop.f32.mrf.mxu0 }
  0xf1   : > { %v713_v63 = vadd.f32 %v2334_v20, %v712_v62 }
  0xf3   : > { %v856_v2 = vmax.f32 %v713_v63, 0.0 }
  0xf5   : > { %v914_v3 = vpack.c.bf16 %v856_v2, %v855_v1 }
  0xf7   : > { %1042 = vmatmul.bf16.gmra.mxu1 %v914_v3 }
  0xf8   : > { %v715_v6 = vpop.f32.mrf.mxu0 }
  0xf9   : > { %v716_v9 = vadd.f32 %v2334_v20, %v715_v6  ;;  %v2018_v6 = vld [vmem:[%s2288_s29 + $0x98] sm:$0xff] }
  0xfb   : > { %1912 = vmatmul.msk.bf16.gmra.mxu0 %vm579_vm0, %v2013_v5  ;;  %v857_v13 = vmax.f32 %v716_v9, 0.0 }
 0x100   : > { %v717_v10 = vpop.f32.mrf.mxu0 }
 0x101   : > { %v718_v11 = vadd.f32 %v2334_v20, %v717_v10 }
 0x103   : > { %v858_v14 = vmax.f32 %v718_v11, 0.0 }
 0x105   : > { %v915_v15 = vpack.c.bf16 %v858_v14, %v857_v13 }
 0x107   : > { %1047 = vmatmul.bf16.gmra.mxu1 %v915_v15 }
 0x108   : > { %v720_v18 = vpop.f32.mrf.mxu0 }
 0x109   : > { %v721_v22 = vadd.f32 %v2334_v20, %v720_v18 }
 0x10b   : > { %1913 = vmatmul.msk.bf16.gmra.mxu0 %vm579_vm0, %v2014_v17  ;;  %v859_v25 = vmax.f32 %v721_v22, 0.0 }
 0x110   : > { %v722_v23 = vpop.f32.mrf.mxu0 }
 0x111   : > { %v723_v24 = vadd.f32 %v2334_v20, %v722_v23 }
 0x113   : > { %v860_v26 = vmax.f32 %v723_v24, 0.0 }
 0x115   : > { %v916_v27 = vpack.c.bf16 %v860_v26, %v859_v25 }
 0x117   : > { %1052 = vmatmul.bf16.gmra.mxu1 %v916_v27 }
 0x118   : > { %v725_v29 = vpop.f32.mrf.mxu0 }
 0x119   : > { %v726_v30 = vadd.f32 %v2334_v20, %v725_v29 }
 0x11b   : > { %1914 = vmatmul.msk.bf16.gmra.mxu0 %vm579_vm0, %v2015_v28  ;;  %v861_v33 = vmax.f32 %v726_v30, 0.0  ;;  %v2019_v28 = vld [vmem:[%s2288_s29 + $0xa0] sm:$0xff] }
 0x120   : > { %v727_v31 = vpop.f32.mrf.mxu0 }
 0x121   : > { %v728_v32 = vadd.f32 %v2334_v20, %v727_v31 }
 0x123   : > { %v862_v34 = vmax.f32 %v728_v32, 0.0 }
 0x124   : > { %v1018_v35 = vpop.f32.mrf.mxu1 }
 0x125   : > { %v917_v36 = vpack.c.bf16 %v862_v34, %v861_v33  ;;  %v1019_v40 = vadd.f32 %v2422_v37, %v1018_v35 }
 0x127   : > { %1057 = vmatmul.bf16.gmra.mxu1 %v917_v36  ;;  %v1178_v43 = vmax.f32 %v1019_v40, 0.0 }
 0x128   : > { %v730_v39 = vpop.f32.mrf.mxu0 }
 0x129   : > { %v731_v44 = vadd.f32 %v2334_v20, %v730_v39 }
 0x12b   : > { %1915 = vmatmul.msk.bf16.gmra.mxu0 %vm579_vm0, %v2016_v38  ;;  %v863_v49 = vmax.f32 %v731_v44, 0.0  ;;  %v2020_v44 = vld [vmem:[%s2288_s29 + $0xa8] sm:$0xff] }
 0x12c   : > { %v1020_v41 = vpop.f32.mrf.mxu1 }
 0x12d   : > { %v1021_v42 = vadd.f32 %v2422_v37, %v1020_v41 }
 0x12f   : > { %v1179_v45 = vmax.f32 %v1021_v42, 0.0 }
 0x130   : > { %v732_v46 = vpop.f32.mrf.mxu0 }
 0x131   : > { %v733_v47 = vadd.f32 %v2334_v20, %v732_v46  ;;  %v1242_v48 = vpack.c.bf16 %v1179_v45, %v1178_v43 }
 0x133   : > { %v864_v50 = vmax.f32 %v733_v47, 0.0  ;;  %1350 = vmatmul.bf16.vlgmr.msra.gmra.mxu2 %v1242_v48 }
 0x134   : > { %v1023_v51 = vpop.f32.mrf.mxu1 }
 0x135   : > { %v918_v52 = vpack.c.bf16 %v864_v50, %v863_v49  ;;  %v1024_v55 = vadd.f32 %v2422_v37, %v1023_v51 }
 0x137   : > { %1062 = vmatmul.bf16.gmra.mxu1 %v918_v52  ;;  %v1180_v58 = vmax.f32 %v1024_v55, 0.0 }
 0x138   : > { %v735_v54 = vpop.f32.mrf.mxu0 }
 0x139   : > { %v736_v59 = vadd.f32 %v2334_v20, %v735_v54 }
 0x13b   : > { %1916 = vmatmul.msk.bf16.gmra.mxu0 %vm579_vm0, %v2017_v53  ;;  %v865_v1 = vmax.f32 %v736_v59, 0.0  ;;  %v2021_v59 = vld [vmem:[%s2288_s29 + $0xb0] sm:$0xff] }
 0x13c   : > { %v1025_v56 = vpop.f32.mrf.mxu1 }
 0x13d   : > { %v1026_v57 = vadd.f32 %v2422_v37, %v1025_v56 }
 0x13f   : > { %v1181_v60 = vmax.f32 %v1026_v57, 0.0 }
 0x140   : > { %v737_v61 = vpop.f32.mrf.mxu0 }
 0x141   : > { %v738_v62 = vadd.f32 %v2334_v20, %v737_v61  ;;  %v1243_v63 = vpack.c.bf16 %v1181_v60, %v1180_v58 }
 0x143   : > { %v866_v2 = vmax.f32 %v738_v62, 0.0  ;;  %1355 = vmatmul.bf16.gmra.mxu2 %v1243_v63 }
 0x144   : > { %v1028_v3 = vpop.f32.mrf.mxu1 }
 0x145   : > { %v919_v5 = vpack.c.bf16 %v866_v2, %v865_v1  ;;  %v1029_v10 = vadd.f32 %v2422_v37, %v1028_v3 }
 0x147   : > { %1067 = vmatmul.bf16.gmra.mxu1 %v919_v5  ;;  %v1182_v14 = vmax.f32 %v1029_v10, 0.0 }
 0x148   : > { %v740_v9 = vpop.f32.mrf.mxu0 }
 0x149   : > { %v741_v15 = vadd.f32 %v2334_v20, %v740_v9 }
 0x14b   : > { %1917 = vmatmul.msk.bf16.gmra.mxu0 %vm579_vm0, %v2018_v6  ;;  %v867_v24 = vmax.f32 %v741_v15, 0.0  ;;  %v2022_v15 = vld [vmem:[%s2288_s29 + $0xb8] sm:$0xff] }
 0x14c   : > { %v1030_v11 = vpop.f32.mrf.mxu1 }
 0x14d   : > { %v1031_v13 = vadd.f32 %v2422_v37, %v1030_v11 }
 0x14f   : > { %v1183_v17 = vmax.f32 %v1031_v13, 0.0 }
 0x150   : > { %v742_v18 = vpop.f32.mrf.mxu0 }
 0x151   : > { %v743_v22 = vadd.f32 %v2334_v20, %v742_v18  ;;  %v1244_v23 = vpack.c.bf16 %v1183_v17, %v1182_v14 }
 0x153   : > { %v868_v25 = vmax.f32 %v743_v22, 0.0  ;;  %1360 = vmatmul.bf16.gmra.mxu2 %v1244_v23 }
 0x154   : > { %v1033_v26 = vpop.f32.mrf.mxu1 }
 0x155   : > { %v920_v27 = vpack.c.bf16 %v868_v25, %v867_v24  ;;  %v1034_v30 = vadd.f32 %v2422_v37, %v1033_v26 }
 0x157   : > { %1072 = vmatmul.bf16.gmra.mxu1 %v920_v27  ;;  %v1184_v33 = vmax.f32 %v1034_v30, 0.0 }
 0x158   : > { %v745_v29 = vpop.f32.mrf.mxu0 }
 0x159   : > { %v746_v34 = vadd.f32 %v2334_v20, %v745_v29 }
 0x15b   : > { %1918 = vmatmul.msk.bf16.gmra.mxu0 %vm579_vm0, %v2019_v28  ;;  %v869_v40 = vmax.f32 %v746_v34, 0.0  ;;  %v2023_v34 = vld [vmem:[%s2288_s29 + $0xc0] sm:$0xff] }
 0x15c   : > { %v1035_v31 = vpop.f32.mrf.mxu1 }
 0x15d   : > { %v1036_v32 = vadd.f32 %v2422_v37, %v1035_v31 }
 0x15f   : > { %v1185_v35 = vmax.f32 %v1036_v32, 0.0 }
 0x160   : > { %v747_v36 = vpop.f32.mrf.mxu0 }
 0x161   : > { %v748_v38 = vadd.f32 %v2334_v20, %v747_v36  ;;  %v1245_v39 = vpack.c.bf16 %v1185_v35, %v1184_v33 }
 0x163   : > { %v870_v41 = vmax.f32 %v748_v38, 0.0  ;;  %1365 = vmatmul.bf16.gmra.mxu2 %v1245_v39 }
 0x164   : > { %v1038_v42 = vpop.f32.mrf.mxu1 }
 0x165   : > { %v921_v43 = vpack.c.bf16 %v870_v41, %v869_v40  ;;  %v1039_v46 = vadd.f32 %v2422_v37, %v1038_v42 }
 0x167   : > { %1077 = vmatmul.bf16.gmra.mxu1 %v921_v43  ;;  %v1186_v49 = vmax.f32 %v1039_v46, 0.0 }
 0x168   : > { %v750_v45 = vpop.f32.mrf.mxu0 }
 0x169   : > { %v751_v50 = vadd.f32 %v2334_v20, %v750_v45 }
 0x16b   : > { %1919 = vmatmul.msk.bf16.gmra.mxu0 %vm579_vm0, %v2020_v44  ;;  %v871_v55 = vmax.f32 %v751_v50, 0.0  ;;  %v2024_v50 = vld [vmem:[%s2288_s29 + $0xc8] sm:$0xff] }
 0x16c   : > { %v1040_v47 = vpop.f32.mrf.mxu1 }
 0x16d   : > { %v1041_v48 = vadd.f32 %v2422_v37, %v1040_v47 }
 0x16f   : > { %v1187_v51 = vmax.f32 %v1041_v48, 0.0 }
 0x170   : > { %v752_v52 = vpop.f32.mrf.mxu0 }
 0x171   : > { %v753_v53 = vadd.f32 %v2334_v20, %v752_v52  ;;  %v1246_v54 = vpack.c.bf16 %v1187_v51, %v1186_v49 }
 0x173   : > { %v872_v56 = vmax.f32 %v753_v53, 0.0  ;;  %1370 = vmatmul.bf16.gmra.mxu2 %v1246_v54  ;;  %v2027_v53 = vld [vmem:[%s2288_s29 + $0xe0] sm:$0xff] }
 0x174   : > { %v1043_v57 = vpop.f32.mrf.mxu1  ;;  %1926 = vmatmul.msk.bf16.vlgmr.msra.gmra.mxu3 %vm579_vm0, %v2027_v53 }
 0x175   : > { %v922_v58 = vpack.c.bf16 %v872_v56, %v871_v55  ;;  %v1044_v61 = vadd.f32 %v2422_v37, %v1043_v57  ;;  %2060 = vmatpush.bf16.msra.mxu3 %v2362_v0  ;;  %v2025_v0 = vld [vmem:[%s2288_s29 + $0xd0] sm:$0xff] }
 0x177   : > { %1082 = vmatmul.bf16.gmra.mxu1 %v922_v58  ;;  %v1188_v1 = vmax.f32 %v1044_v61, 0.0 }
 0x178   : > { %v755_v60 = vpop.f32.mrf.mxu0 }
 0x179   : > { %v756_v2 = vadd.f32 %v2334_v20, %v755_v60  ;;  %2061 = vmatpush.bf16.msra.mxu3 %v2368_v4 }
 0x17b   : > { %1920 = vmatmul.msk.bf16.gmra.mxu0 %vm579_vm0, %v2021_v59  ;;  %v873_v10 = vmax.f32 %v756_v2, 0.0 }
 0x17c   : > { %v1045_v62 = vpop.f32.mrf.mxu1 }
 0x17d   : > { %v1046_v63 = vadd.f32 %v2422_v37, %v1045_v62  ;;  %2062 = vmatpush.bf16.msra.mxu3 %v2375_v7 }
 0x17f   : > { %v1189_v3 = vmax.f32 %v1046_v63, 0.0 }
 0x180   : > { %v757_v5 = vpop.f32.mrf.mxu0 }
 0x181   : > { %v758_v6 = vadd.f32 %v2334_v20, %v757_v5  ;;  %v1247_v9 = vpack.c.bf16 %v1189_v3, %v1188_v1  ;;  %2063 = vmatpush.bf16.msra.mxu3 %v2382_v8 }
 0x183   : > { %v874_v11 = vmax.f32 %v758_v6, 0.0  ;;  %1375 = vmatmul.bf16.gmra.mxu2 %v1247_v9  ;;  %v2487_v6 = vld [vmem:[%s2769_s6] ss:$0 sm:$0xff]  ;;  %v2028_v9 = vld [vmem:[%s2288_s29 + $0xe8] sm:$0xff] }
 0x184   : > { %v1048_v13 = vpop.f32.mrf.mxu1  ;;  %1927 = vmatmul.msk.bf16.gmra.mxu3 %vm579_vm0, %v2028_v9 }
 0x185   : > { %v923_v14 = vpack.c.bf16 %v874_v11, %v873_v10  ;;  %v1049_v18 = vadd.f32 %v2422_v37, %v1048_v13  ;;  %2064 = vmatpush.bf16.msra.mxu3 %v2390_v12 }
 0x187   : > { %1087 = vmatmul.bf16.gmra.mxu1 %v923_v14  ;;  %v1190_v24 = vmax.f32 %v1049_v18, 0.0 }
 0x188   : > { %v760_v17 = vpop.f32.mrf.mxu0 }
 0x189   : > { %v761_v25 = vadd.f32 %v2334_v20, %v760_v17  ;;  %2065 = vmatpush.bf16.msra.mxu3 %v2396_v16  ;;  %v2029_v16 = vld [vmem:[%s2288_s29 + $0xf0] sm:$0xff] }
 0x18b   : > { %1921 = vmatmul.msk.bf16.gmra.mxu0 %vm579_vm0, %v2022_v15  ;;  %v875_v30 = vmax.f32 %v761_v25, 0.0 }
 0x18c   : > { %v1050_v22 = vpop.f32.mrf.mxu1 }
 0x18d   : > { %v1051_v23 = vadd.f32 %v2422_v37, %v1050_v22  ;;  %2066 = vmatpush.bf16.msra.mxu3 %v2403_v19 }
 0x18f   : > { %v1191_v26 = vmax.f32 %v1051_v23, 0.0 }
 0x190   : > { %v762_v27 = vpop.f32.mrf.mxu0 }
 0x191   : > { %v763_v28 = vadd.f32 %v2334_v20, %v762_v27  ;;  %v1248_v29 = vpack.c.bf16 %v1191_v26, %v1190_v24  ;;  %2067 = vmatpush.bf16.msra.mxu3 %v2410_v21 }
 0x193   : > { %v876_v31 = vmax.f32 %v763_v28, 0.0  ;;  %1380 = vmatmul.bf16.gmra.mxu2 %v1248_v29 }
 0x194   : > { %v1053_v32 = vpop.f32.mrf.mxu1  ;;  %1928 = vmatmul.msk.bf16.gmra.mxu3 %vm579_vm0, %v2029_v16 }
 0x195   : > { %v924_v33 = vpack.c.bf16 %v876_v31, %v875_v30  ;;  %v1054_v36 = vadd.f32 %v2422_v37, %v1053_v32  ;;  %v2026_v31 = vld [vmem:[%s2288_s29 + $0xd8] sm:$0xff] }
 0x197   : > { %1092 = vmatmul.bf16.gmra.mxu1 %v924_v33  ;;  %v1192_v40 = vmax.f32 %v1054_v36, 0.0 }
 0x198   : > { %v765_v35 = vpop.f32.mrf.mxu0 }
 0x199   : > { %v766_v41 = vadd.f32 %v2334_v20, %v765_v35 }
 0x19b   : > { %1922 = vmatmul.msk.bf16.gmra.mxu0 %vm579_vm0, %v2023_v34  ;;  %v877_v46 = vmax.f32 %v766_v41, 0.0 }
 0x19c   : > { %v1055_v38 = vpop.f32.mrf.mxu1 }
 0x19d   : > { %v1056_v39 = vadd.f32 %v2422_v37, %v1055_v38 }
 0x19f   : > { %v1193_v42 = vmax.f32 %v1056_v39, 0.0 }
 0x1a0   : > { %v767_v43 = vpop.f32.mrf.mxu0 }
 0x1a1   : > { %v768_v44 = vadd.f32 %v2334_v20, %v767_v43  ;;  %v1249_v45 = vpack.c.bf16 %v1193_v42, %v1192_v40 }
 0x1a3   : > { %v878_v47 = vmax.f32 %v768_v44, 0.0  ;;  %1385 = vmatmul.bf16.gmra.mxu2 %v1249_v45 }
 0x1a4   : > { %v1058_v48 = vpop.f32.mrf.mxu1 }
 0x1a5   : > { %v925_v49 = vpack.c.bf16 %v878_v47, %v877_v46  ;;  %v1059_v52 = vadd.f32 %v2422_v37, %v1058_v48 }
 0x1a7   : > { %1097 = vmatmul.bf16.gmra.mxu1 %v925_v49  ;;  %v1194_v56 = vmax.f32 %v1059_v52, 0.0 }
 0x1a8   : > { %v770_v51 = vpop.f32.mrf.mxu0 }
 0x1a9   : > { %v771_v57 = vadd.f32 %v2334_v20, %v770_v51 }
 0x1ab   : > { %1923 = vmatmul.msk.bf16.gmra.mxu0 %vm579_vm0, %v2024_v50  ;;  %v879_v62 = vmax.f32 %v771_v57, 0.0 }
 0x1ac   : > { %v1060_v54 = vpop.f32.mrf.mxu1 }
 0x1ad   : > { %v1061_v55 = vadd.f32 %v2422_v37, %v1060_v54  ;;  %v2030_v54 = vld [vmem:[%s2288_s29 + $0xf8] sm:$0xff]  ;;  %s326_s29 = scalar_lea.vmem [#allocation2], %s1759_s22 }
 0x1ae   : > { %1929 = vmatmul.msk.bf16.gmra.mxu3 %vm579_vm0, %v2030_v54  ;;  %s1693_s27 = sshll.u32 %s326_s29, 4  ;;  %s1694_s27 = int_to_ptr.vmem [resolvable:$true] %s1693_s27 }
 0x1af   : > { %v1195_v58 = vmax.f32 %v1061_v55, 0.0 }
 0x1b0   : > { %v772_v59 = vpop.f32.mrf.mxu0 }
 0x1b1   : > { %v773_v60 = vadd.f32 %v2334_v20, %v772_v59  ;;  %v1250_v61 = vpack.c.bf16 %v1195_v58, %v1194_v56 }
 0x1b3   : > { %v880_v63 = vmax.f32 %v773_v60, 0.0  ;;  %1390 = vmatmul.bf16.gmra.mxu2 %v1250_v61 }
 0x1b4   : > { %v1063_v1 = vpop.f32.mrf.mxu1 }
 0x1b5   : > { %v926_v2 = vpack.c.bf16 %v880_v63, %v879_v62  ;;  %v1064_v4 = vadd.f32 %v2422_v37, %v1063_v1 }
 0x1b6   : > { %v1351_v3 = vpop.f32.mrf.mxu2 }
 0x1b7   : > { %1102 = vmatmul.bf16.gmra.mxu1 %v926_v2  ;;  %v1352_v11 = vadd.f32 %v2487_v6, %v1351_v3  ;;  %v1196_v14 = vmax.f32 %v1064_v4, 0.0 }
 0x1b8   : > { %v775_v5 = vpop.f32.mrf.mxu0 }
 0x1b9   : > { %v776_v15 = vadd.f32 %v2334_v20, %v775_v5  ;;  %v1511_v22 = vmax.f32 %v1352_v11, 0.0 }
 0x1bb   : > { %1924 = vmatmul.msk.bf16.gmra.mxu0 %vm579_vm0, %v2025_v0  ;;  %v881_v26 = vmax.f32 %v776_v15, 0.0 }
 0x1bc   : > { %v1065_v10 = vpop.f32.mrf.mxu1 }
 0x1bd   : > { %v1066_v7 = vadd.f32 %v2422_v37, %v1065_v10 }
 0x1be   : > { %v1353_v13 = vpop.f32.mrf.mxu2 }
 0x1bf   : > { %v1197_v17 = vmax.f32 %v1066_v7, 0.0  ;;  %v1354_v8 = vadd.f32 %v2487_v6, %v1353_v13 }
 0x1c0   : > { %v777_v18 = vpop.f32.mrf.mxu0 }
 0x1c1   : > { %v1512_v23 = vmax.f32 %v1354_v8, 0.0  ;;  %v778_v24 = vadd.f32 %v2334_v20, %v777_v18  ;;  %v1251_v25 = vpack.c.bf16 %v1197_v17, %v1196_v14 }
 0x1c3   : > { %v882_v27 = vmax.f32 %v778_v24, 0.0  ;;  %1395 = vmatmul.bf16.gmra.mxu2 %v1251_v25  ;;  %v2501_v12 = vpack.c.bf16 %v1512_v23, %v1511_v22 }
 0x1c4   : > { %v1068_v28 = vpop.f32.mrf.mxu1 }
 0x1c5   : > { %v927_v29 = vpack.c.bf16 %v882_v27, %v881_v26  ;;  %v1069_v33 = vadd.f32 %v2422_v37, %v1068_v28 }
 0x1c6   : > { %v1356_v30 = vpop.f32.mrf.mxu2 }
 0x1c7   : > { %1107 = vmatmul.bf16.gmra.mxu1 %v927_v29  ;;  %v1357_v35 = vadd.f32 %v2487_v6, %v1356_v30  ;;  %v1198_v39 = vmax.f32 %v1069_v33, 0.0 }
 0x1c8   : > { %v780_v32 = vpop.f32.mrf.mxu0 }
 0x1c9   : > { %v781_v19 = vadd.f32 %v2334_v20, %v780_v32  ;;  %v1513_v42 = vmax.f32 %v1357_v35, 0.0 }
 0x1cb   : > { %1925 = vmatmul.msk.bf16.gmra.mxu0 %vm579_vm0, %v2026_v31  ;;  %v883_v46 = vmax.f32 %v781_v19, 0.0 }
 0x1cc   : > { %v1070_v34 = vpop.f32.mrf.mxu1 }
 0x1cd   : > { %v1071_v36 = vadd.f32 %v2422_v37, %v1070_v34 }
 0x1ce   : > { %v1358_v38 = vpop.f32.mrf.mxu2 }
 0x1cf   : > { %v1199_v40 = vmax.f32 %v1071_v36, 0.0  ;;  %v1359_v41 = vadd.f32 %v2487_v6, %v1358_v38 }
 0x1d0   : > { %v782_v21 = vpop.f32.mrf.mxu0 }
 0x1d1   : > { %v1514_v43 = vmax.f32 %v1359_v41, 0.0  ;;  %v783_v44 = vadd.f32 %v2334_v20, %v782_v21  ;;  %v1252_v45 = vpack.c.bf16 %v1199_v40, %v1198_v39 }
 0x1d3   : > { %v884_v47 = vmax.f32 %v783_v44, 0.0  ;;  %1400 = vmatmul.bf16.gmra.mxu2 %v1252_v45  ;;  %v2515_v48 = vpack.c.bf16 %v1514_v43, %v1513_v42 }
 0x1d4   : > { %v1073_v49 = vpop.f32.mrf.mxu1 }
 0x1d5   : > { %v928_v50 = vpack.c.bf16 %v884_v47, %v883_v46  ;;  %v1074_v53 = vadd.f32 %v2422_v37, %v1073_v49 }
 0x1d6   : > { %v1361_v51 = vpop.f32.mrf.mxu2 }
 0x1d7   : > { %1112 = vmatmul.bf16.gmra.mxu1 %v928_v50  ;;  %v1362_v56 = vadd.f32 %v2487_v6, %v1361_v51  ;;  %v1200_v59 = vmax.f32 %v1074_v53, 0.0 }
 0x1d8   : > { %v785_v52 = vpop.f32.mrf.mxu0 }
 0x1d9   : > { %v786_v60 = vadd.f32 %v2334_v20, %v785_v52  ;;  %v1515_v1 = vmax.f32 %v1362_v56, 0.0 }
 0x1db   : > { %v885_v5 = vmax.f32 %v786_v60, 0.0 }
 0x1dc   : > { %v1075_v55 = vpop.f32.mrf.mxu1 }
 0x1dd   : > { %v1076_v57 = vadd.f32 %v2422_v37, %v1075_v55 }
 0x1de   : > { %v1363_v58 = vpop.f32.mrf.mxu2 }
 0x1df   : > { %v1201_v61 = vmax.f32 %v1076_v57, 0.0  ;;  %v1364_v62 = vadd.f32 %v2487_v6, %v1363_v58 }
 0x1e0   : > { %v787_v63 = vpop.f32.mrf.mxu0 }
 0x1e1   : > { %v1516_v2 = vmax.f32 %v1364_v62, 0.0  ;;  %v788_v3 = vadd.f32 %v2334_v20, %v787_v63  ;;  %v1253_v0 = vpack.c.bf16 %v1201_v61, %v1200_v59 }
 0x1e3   : > { %v886_v4 = vmax.f32 %v788_v3, 0.0  ;;  %1405 = vmatmul.bf16.gmra.mxu2 %v1253_v0  ;;  %v2525_v9 = vpack.c.bf16 %v1516_v2, %v1515_v1 }
 0x1e4   : > { %v1078_v10 = vpop.f32.mrf.mxu1 }
 0x1e5   : > { %v929_v11 = vpack.c.bf16 %v886_v4, %v885_v5  ;;  %v1079_v14 = vadd.f32 %v2422_v37, %v1078_v10 }
 0x1e6   : > { %v1366_v7 = vpop.f32.mrf.mxu2 }
 0x1e7   : > { %1117 = vmatmul.bf16.gmra.mxu1 %v929_v11  ;;  %v1367_v17 = vadd.f32 %v2487_v6, %v1366_v7  ;;  %v1202_v22 = vmax.f32 %v1079_v14, 0.0 }
 0x1e8   : > { %v790_v13 = vpop.f32.mrf.mxu0 }
 0x1e9   : > { %v791_v23 = vadd.f32 %v2334_v20, %v790_v13  ;;  %v1517_v27 = vmax.f32 %v1367_v17, 0.0 }
 0x1eb   : > { %v887_v31 = vmax.f32 %v791_v23, 0.0 }
 0x1ec   : > { %v1080_v15 = vpop.f32.mrf.mxu1 }
 0x1ed   : > { %v1081_v8 = vadd.f32 %v2422_v37, %v1080_v15 }
 0x1ee   : > { %v1368_v18 = vpop.f32.mrf.mxu2 }
 0x1ef   : > { %v1203_v24 = vmax.f32 %v1081_v8, 0.0  ;;  %v1369_v25 = vadd.f32 %v2487_v6, %v1368_v18 }
 0x1f0   : > { %v792_v26 = vpop.f32.mrf.mxu0 }
 0x1f1   : > { %v1518_v28 = vmax.f32 %v1369_v25, 0.0  ;;  %v793_v29 = vadd.f32 %v2334_v20, %v792_v26  ;;  %v1254_v30 = vpack.c.bf16 %v1203_v24, %v1202_v22 }
 0x1f3   : > { %v888_v32 = vmax.f32 %v793_v29, 0.0  ;;  %1410 = vmatmul.bf16.gmra.mxu2 %v1254_v30  ;;  %v2533_v33 = vpack.c.bf16 %v1518_v28, %v1517_v27 }
 0x1f4   : > { %v1083_v16 = vpop.f32.mrf.mxu1 }
 0x1f5   : > { %v930_v34 = vpack.c.bf16 %v888_v32, %v887_v31  ;;  %v1084_v38 = vadd.f32 %v2422_v37, %v1083_v16 }
 0x1f6   : > { %v1371_v35 = vpop.f32.mrf.mxu2 }
 0x1f7   : > { %1122 = vmatmul.bf16.gmra.mxu1 %v930_v34  ;;  %v1372_v19 = vadd.f32 %v2487_v6, %v1371_v35  ;;  %v1204_v21 = vmax.f32 %v1084_v38, 0.0 }
 0x1f8   : > { %v795_v36 = vpop.f32.mrf.mxu0 }
 0x1f9   : > { %v796_v42 = vadd.f32 %v2334_v20, %v795_v36  ;;  %v1519_v46 = vmax.f32 %v1372_v19, 0.0 }
 0x1fb   : > { %v889_v51 = vmax.f32 %v796_v42, 0.0 }
 0x1fc   : > { %v1085_v39 = vpop.f32.mrf.mxu1 }
 0x1fd   : > { %v1086_v40 = vadd.f32 %v2422_v37, %v1085_v39 }
 0x1fe   : > { %v1373_v41 = vpop.f32.mrf.mxu2 }
 0x1ff   : > { %v1205_v43 = vmax.f32 %v1086_v40, 0.0  ;;  %v1374_v44 = vadd.f32 %v2487_v6, %v1373_v41 }
 0x200   : > { %v797_v45 = vpop.f32.mrf.mxu0 }
 0x201   : > { %v1520_v47 = vmax.f32 %v1374_v44, 0.0  ;;  %v798_v49 = vadd.f32 %v2334_v20, %v797_v45  ;;  %v1255_v50 = vpack.c.bf16 %v1205_v43, %v1204_v21 }
 0x203   : > { %v890_v52 = vmax.f32 %v798_v49, 0.0  ;;  %1415 = vmatmul.bf16.gmra.mxu2 %v1255_v50  ;;  %v2541_v53 = vpack.c.bf16 %v1520_v47, %v1519_v46 }
 0x204   : > { %v1088_v54 = vpop.f32.mrf.mxu1 }
 0x205   : > { %v931_v55 = vpack.c.bf16 %v890_v52, %v889_v51  ;;  %v1089_v58 = vadd.f32 %v2422_v37, %v1088_v54 }
 0x206   : > { %v1376_v56 = vpop.f32.mrf.mxu2 }
 0x207   : > { %1127 = vmatmul.bf16.gmra.mxu1 %v931_v55  ;;  %v1377_v60 = vadd.f32 %v2487_v6, %v1376_v56  ;;  %v1206_v63 = vmax.f32 %v1089_v58, 0.0 }
 0x208   : > { %v800_v57 = vpop.f32.mrf.mxu0 }
 0x209   : > { %v801_v1 = vadd.f32 %v2334_v20, %v800_v57  ;;  %v1521_v5 = vmax.f32 %v1377_v60, 0.0 }
 0x20b   : > { %v891_v7 = vmax.f32 %v801_v1, 0.0 }
 0x20c   : > { %v1090_v59 = vpop.f32.mrf.mxu1 }
 0x20d   : > { %v1091_v61 = vadd.f32 %v2422_v37, %v1090_v59 }
 0x20e   : > { %v1378_v62 = vpop.f32.mrf.mxu2 }
 0x20f   : > { %v1207_v2 = vmax.f32 %v1091_v61, 0.0  ;;  %v1379_v3 = vadd.f32 %v2487_v6, %v1378_v62 }
 0x210   : > { %v802_v0 = vpop.f32.mrf.mxu0 }
 0x211   : > { %v1522_v4 = vmax.f32 %v1379_v3, 0.0  ;;  %v803_v10 = vadd.f32 %v2334_v20, %v802_v0  ;;  %v1256_v11 = vpack.c.bf16 %v1207_v2, %v1206_v63 }
 0x213   : > { %v892_v13 = vmax.f32 %v803_v10, 0.0  ;;  %1420 = vmatmul.bf16.gmra.mxu2 %v1256_v11  ;;  %v2549_v14 = vpack.c.bf16 %v1522_v4, %v1521_v5 }
 0x214   : > { %v1093_v15 = vpop.f32.mrf.mxu1 }
 0x215   : > { %v932_v17 = vpack.c.bf16 %v892_v13, %v891_v7  ;;  %v1094_v22 = vadd.f32 %v2422_v37, %v1093_v15  ;;  %v825_v13 = vpop.f32.mrf.mxu3 }
 0x216   : > { %v2551_v8 = vpop.f32.mrf.mxu2 }
 0x217   : > { %1132 = vmatmul.bf16.gmra.mxu1 %v932_v17  ;;  %v1208_v26 = vmax.f32 %v1094_v22, 0.0 }
 0x218   : > { %v805_v18 = vpop.f32.mrf.mxu0 }
 0x219   : > { %v806_v27 = vadd.f32 %v2334_v20, %v805_v18 }
 0x21b   : > { %v893_v32 = vmax.f32 %v806_v27, 0.0 }
 0x21c   : > { %v1095_v23 = vpop.f32.mrf.mxu1 }
 0x21d   : > { %v1096_v24 = vadd.f32 %v2422_v37, %v1095_v23 }
 0x21e   : > { %v2555_v25 = vpop.f32.mrf.mxu2 }
 0x21f   : > { %v1209_v28 = vmax.f32 %v1096_v24, 0.0 }
 0x220   : > { %v807_v29 = vpop.f32.mrf.mxu0 }
 0x221   : > { %v1257_v30 = vpack.c.bf16 %v1209_v28, %v1208_v26  ;;  %v808_v31 = vadd.f32 %v2334_v20, %v807_v29  ;;  %v827_v29 = vpop.f32.mrf.mxu3 }
 0x223   : > { %v894_v16 = vmax.f32 %v808_v31, 0.0  ;;  %1425 = vmatmul.bf16.gmra.mxu2 %v1257_v30 }
 0x224   : > { %v1098_v34 = vpop.f32.mrf.mxu1 }
 0x225   : > { %v933_v35 = vpack.c.bf16 %v894_v16, %v893_v32  ;;  %v1099_v39 = vadd.f32 %v2422_v37, %v1098_v34 }
 0x226   : > { %v1386_v36 = vpop.f32.mrf.mxu2 }
 0x227   : > { %1137 = vmatmul.bf16.gmra.mxu1 %v933_v35  ;;  %v1210_v21 = vmax.f32 %v1099_v39, 0.0  ;;  %v1387_v34 = vadd.f32 %v2487_v6, %v1386_v36 }
 0x228   : > { %v810_v38 = vpop.f32.mrf.mxu0 }
 0x229   : > { %v811_v42 = vadd.f32 %v2334_v20, %v810_v38 }
 0x22b   : > { %v895_v47 = vmax.f32 %v811_v42, 0.0 }
 0x22c   : > { %v1100_v19 = vpop.f32.mrf.mxu1 }
 0x22d   : > { %v1101_v40 = vadd.f32 %v2422_v37, %v1100_v19 }
 0x22e   : > { %v1388_v41 = vpop.f32.mrf.mxu2 }
 0x22f   : > { %v1211_v43 = vmax.f32 %v1101_v40, 0.0  ;;  %v1389_v27 = vadd.f32 %v2487_v6, %v1388_v41 }
 0x230   : > { %v812_v44 = vpop.f32.mrf.mxu0 }
 0x231   : > { %v1258_v45 = vpack.c.bf16 %v1211_v43, %v1210_v21  ;;  %v813_v46 = vadd.f32 %v2334_v20, %v812_v44  ;;  %v1526_v21 = vmax.f32 %v1389_v27, 0.0  ;;  %v1525_v44 = vmax.f32 %v1387_v34, 0.0 }
 0x233   : > { %v896_v49 = vmax.f32 %v813_v46, 0.0  ;;  %1430 = vmatmul.bf16.gmra.mxu2 %v1258_v45 }
 0x234   : > { %v1103_v50 = vpop.f32.mrf.mxu1 }
 0x235   : > { %v934_v51 = vpack.c.bf16 %v896_v49, %v895_v47  ;;  %v1104_v55 = vadd.f32 %v2422_v37, %v1103_v50  ;;  %v1384_v47 = vadd.f32 %v2487_v6, %v2555_v25  ;;  %v1582_v49 = vpack.c.bf16 %v1526_v21, %v1525_v44 }
 0x236   : > { %v1391_v52 = vpop.f32.mrf.mxu2  ;;  %v1382_v50 = vadd.f32 %v2487_v6, %v2551_v8 }
 0x237   : > { %1142 = vmatmul.bf16.gmra.mxu1 %v934_v51  ;;  %v1392_v57 = vadd.f32 %v2487_v6, %v1391_v52  ;;  %v1212_v60 = vmax.f32 %v1104_v55, 0.0  ;;  %v1524_v51 = vmax.f32 %v1384_v47, 0.0  ;;  %v2589_v55 = vld [vmem:[%s2765_s2] ss:$0 sm:$0xff] }
 0x238   : > { %v815_v54 = vpop.f32.mrf.mxu0 }
 0x239   : > { %v816_v61 = vadd.f32 %v2334_v20, %v815_v54  ;;  %v1527_v2 = vmax.f32 %v1392_v57, 0.0  ;;  %v1523_v54 = vmax.f32 %v1382_v50, 0.0 }
 0x23b   : > { %v897_v4 = vmax.f32 %v816_v61, 0.0 }
 0x23c   : > { %v1105_v56 = vpop.f32.mrf.mxu1 }
 0x23d   : > { %v1106_v58 = vadd.f32 %v2422_v37, %v1105_v56  ;;  %v826_v56 = vadd.f32 %v2589_v55, %v825_v13 }
 0x23e   : > { %v1393_v59 = vpop.f32.mrf.mxu2 }
 0x23f   : > { %v1213_v62 = vmax.f32 %v1106_v58, 0.0  ;;  %v1394_v63 = vadd.f32 %v2487_v6, %v1393_v59  ;;  %v828_v58 = vadd.f32 %v2589_v55, %v827_v29 }
 0x240   : > { %v817_v1 = vpop.f32.mrf.mxu0 }
 0x241   : > { %v1259_v3 = vpack.c.bf16 %v1213_v62, %v1212_v60  ;;  %v1528_v0 = vmax.f32 %v1394_v63, 0.0  ;;  %v818_v5 = vadd.f32 %v2334_v20, %v817_v1  ;;  %v1581_v60 = vpack.c.bf16 %v1524_v51, %v1523_v54 }
 0x242   : > { %v901_v1 = vmax.f32 %v826_v56, 0.0 }
 0x243   : > { %v898_v10 = vmax.f32 %v818_v5, 0.0  ;;  %1435 = vmatmul.bf16.gmra.mxu2 %v1259_v3  ;;  %v2569_v11 = vpack.c.bf16 %v1528_v0, %v1527_v2  ;;  %v902_v3 = vmax.f32 %v828_v58, 0.0 }
 0x244   : > { %v1108_v7 = vpop.f32.mrf.mxu1 }
 0x245   : > { %v935_v15 = vpack.c.bf16 %v898_v10, %v897_v4  ;;  %v1109_v22 = vadd.f32 %v2422_v37, %v1108_v7  ;;  %v937_v13 = vpack.c.bf16 %v902_v3, %v901_v1 }
 0x246   : > { %v1396_v17 = vpop.f32.mrf.mxu2 }
 0x247   : > { %1147 = vmatmul.bf16.gmra.mxu1 %v935_v15  ;;  %v1397_v24 = vadd.f32 %v2487_v6, %v1396_v17  ;;  %v1214_v30 = vmax.f32 %v1109_v22, 0.0 }
 0x248   : > { %v820_v18 = vpop.f32.mrf.mxu0 }
 0x249   : > { %v821_v31 = vadd.f32 %v2334_v20, %v820_v18  ;;  %v1529_v38 = vmax.f32 %v1397_v24, 0.0 }
 0x24b   : > { %v899_v42 = vmax.f32 %v821_v31, 0.0 }
 0x24c   : > { %v1110_v23 = vpop.f32.mrf.mxu1 }
 0x24d   : > { %v1111_v26 = vadd.f32 %v2422_v37, %v1110_v23 }
 0x24e   : > { %v1398_v28 = vpop.f32.mrf.mxu2 }
 0x24f   : > { %v1215_v32 = vmax.f32 %v1111_v26, 0.0  ;;  %v1399_v16 = vadd.f32 %v2487_v6, %v1398_v28 }
 0x250   : > { %v822_v35 = vpop.f32.mrf.mxu0 }
 0x251   : > { %v1260_v39 = vpack.c.bf16 %v1215_v32, %v1214_v30  ;;  %v1530_v19 = vmax.f32 %v1399_v16, 0.0  ;;  %v823_v40 = vadd.f32 %v2334_v20, %v822_v35  ;;  %v830_v20 = vpop.f32.mrf.mxu3 }
 0x252   : > { %v831_v18 = vadd.f32 %v2589_v55, %v830_v20 }
 0x253   : > { %v900_v43 = vmax.f32 %v823_v40, 0.0  ;;  %1440 = vmatmul.bf16.gmra.mxu2 %v1260_v39  ;;  %v2579_v41 = vpack.c.bf16 %v1530_v19, %v1529_v38 }
 0x254   : > { %v1113_v45 = vpop.f32.mrf.mxu1  ;;  %v903_v32 = vmax.f32 %v831_v18, 0.0 }
 0x255   : > { %v936_v46 = vpack.c.bf16 %v900_v43, %v899_v42  ;;  %v1114_v52 = vadd.f32 %v2422_v37, %v1113_v45 }
 0x256   : > { %v1401_v36 = vpop.f32.mrf.mxu2 }
 0x257   : > { %1152 = vmatmul.bf16.vlgmr.msrb.gmra.mxu3 %v936_v46  ;;  %v1402_v57 = vadd.f32 %v2487_v6, %v1401_v36  ;;  %v1216_v61 = vmax.f32 %v1114_v52, 0.0 }
 0x258   : > { %1614 = vmatpush.bf16.xpose.msrb.mxu3 %v1582_v49 }
 0x259   : > { %v1531_v2 = vmax.f32 %v1402_v57, 0.0  ;;  %v832_v4 = vpop.f32.mrf.mxu3 }
 0x25a   : > { %v833_v26 = vadd.f32 %v2589_v55, %v832_v4 }
 0x25c   : > { %v1115_v25 = vpop.f32.mrf.mxu1  ;;  %v904_v16 = vmax.f32 %v833_v26, 0.0 }
 0x25d   : > { %v1116_v8 = vadd.f32 %v2422_v37, %v1115_v25 }
 0x25e   : > { %v1403_v59 = vpop.f32.mrf.mxu2  ;;  %v938_v19 = vpack.c.bf16 %v904_v16, %v903_v32 }
 0x25f   : > { %v1217_v62 = vmax.f32 %v1116_v8, 0.0  ;;  %v1404_v63 = vadd.f32 %v2487_v6, %v1403_v59 }
 0x260   : > { %1615 = vmatpush.bf16.xpose.msrb.mxu3 %v1581_v60 }
 0x261   : > { %v1261_v0 = vpack.c.bf16 %v1217_v62, %v1216_v61  ;;  %v1532_v5 = vmax.f32 %v1404_v63, 0.0  ;;  %v835_v23 = vpop.f32.mrf.mxu3 }
 0x262   : > { %v836_v43 = vadd.f32 %v2589_v55, %v835_v23 }
 0x263   : > { %1445 = vmatmul.bf16.gmra.mxu2 %v1261_v0  ;;  %v2596_v10 = vpack.c.bf16 %v1532_v5, %v1531_v2 }
 0x264   : > { %v1118_v7 = vpop.f32.mrf.mxu1  ;;  %v905_v20 = vmax.f32 %v836_v43, 0.0 }
 0x265   : > { %v1119_v17 = vadd.f32 %v2422_v37, %v1118_v7 }
 0x266   : > { %v1406_v15 = vpop.f32.mrf.mxu2 }
 0x267   : > { %1157 = vmatmul.bf16.gmra.mxu3 %v937_v13  ;;  %v1407_v24 = vadd.f32 %v2487_v6, %v1406_v15  ;;  %v1218_v29 = vmax.f32 %v1119_v17, 0.0 }
 0x268   : > { %1616 = vmatpush.bf16.xpose.msrb.mxu3 %v2549_v14 }
 0x269   : > { %v1533_v14 = vmax.f32 %v1407_v24, 0.0  ;;  %v837_v21 = vpop.f32.mrf.mxu3 }
 0x26a   : > { %v838_v45 = vadd.f32 %v2589_v55, %v837_v21 }
 0x26c   : > { %v1120_v22 = vpop.f32.mrf.mxu1  ;;  %v906_v52 = vmax.f32 %v838_v45, 0.0 }
 0x26d   : > { %v1121_v27 = vadd.f32 %v2422_v37, %v1120_v22 }
 0x26e   : > { %v1408_v28 = vpop.f32.mrf.mxu2  ;;  %v939_v58 = vpack.c.bf16 %v906_v52, %v905_v20 }
 0x26f   : > { %v1219_v30 = vmax.f32 %v1121_v27, 0.0  ;;  %v1409_v31 = vadd.f32 %v2487_v6, %v1408_v28 }
 0x270   : > { %1617 = vmatpush.bf16.xpose.msrb.mxu3 %v2541_v53 }
 0x271   : > { %v1262_v34 = vpack.c.bf16 %v1219_v30, %v1218_v29  ;;  %v1534_v35 = vmax.f32 %v1409_v31, 0.0 }
 0x273   : > { %1450 = vmatmul.bf16.gmra.mxu2 %v1262_v34  ;;  %v2606_v38 = vpack.c.bf16 %v1534_v35, %v1533_v14 }
 0x274   : > { %v1123_v39 = vpop.f32.mrf.mxu1 }
 0x275   : > { %v1124_v42 = vadd.f32 %v2422_v37, %v1123_v39 }
 0x276   : > { %v1411_v40 = vpop.f32.mrf.mxu2 }
 0x277   : > { %1162 = vmatmul.bf16.gmra.mxu3 %v938_v19  ;;  %v1412_v53 = vadd.f32 %v2487_v6, %v1411_v40  ;;  %v1220_v49 = vmax.f32 %v1124_v42, 0.0 }
 0x278   : > { %1618 = vmatpush.bf16.xpose.msrb.mxu3 %v2533_v33  ;;  %v840_v33 = vpop.f32.mrf.mxu3 }
 0x279   : > { %v1535_v51 = vmax.f32 %v1412_v53, 0.0  ;;  %v841_v61 = vadd.f32 %v2589_v55, %v840_v33 }
 0x27b   : > { %v907_v4 = vmax.f32 %v841_v61, 0.0 }
 0x27c   : > { %v1125_v44 = vpop.f32.mrf.mxu1 }
 0x27d   : > { %v1126_v46 = vadd.f32 %v2422_v37, %v1125_v44 }
 0x27e   : > { %v1413_v47 = vpop.f32.mrf.mxu2 }
 0x27f   : > { %v1221_v36 = vmax.f32 %v1126_v46, 0.0  ;;  %v1414_v50 = vadd.f32 %v2487_v6, %v1413_v47 }
 0x280   : > { %1619 = vmatpush.bf16.xpose.msrb.mxu3 %v2525_v9  ;;  %v842_v59 = vpop.f32.mrf.mxu3 }
 0x281   : > { %v1263_v54 = vpack.c.bf16 %v1221_v36, %v1220_v49  ;;  %v1536_v56 = vmax.f32 %v1414_v50, 0.0  ;;  %v843_v63 = vadd.f32 %v2589_v55, %v842_v59 }
 0x283   : > { %1455 = vmatmul.bf16.gmra.mxu2 %v1263_v54  ;;  %v2616_v25 = vpack.c.bf16 %v1536_v56, %v1535_v51  ;;  %v908_v7 = vmax.f32 %v843_v63, 0.0 }
 0x284   : > { %v1128_v57 = vpop.f32.mrf.mxu1 }
 0x285   : > { %v1129_v60 = vadd.f32 %v2422_v37, %v1128_v57  ;;  %v940_v22 = vpack.c.bf16 %v908_v7, %v907_v4 }
 0x286   : > { %v1416_v8 = vpop.f32.mrf.mxu2 }
 0x287   : > { %1167 = vmatmul.bf16.gmra.mxu3 %v939_v58  ;;  %v1417_v62 = vadd.f32 %v2487_v6, %v1416_v8  ;;  %v1222_v3 = vmax.f32 %v1129_v60, 0.0 }
 0x288   : > { %1620 = vmatpush.bf16.xpose.msrb.mxu3 %v2515_v48 }
 0x289   : > { %v1537_v48 = vmax.f32 %v1417_v62, 0.0 }
 0x28c   : > { %v1130_v9 = vpop.f32.mrf.mxu1 }
 0x28d   : > { %v1131_v1 = vadd.f32 %v2422_v37, %v1130_v9  ;;  %v2631_v37 = vld [vmem:[%s2767_s4] ss:$0 sm:$0xff] }
 0x28e   : > { %v1418_v2 = vpop.f32.mrf.mxu2 }
 0x28f   : > { %v1223_v0 = vmax.f32 %v1131_v1, 0.0  ;;  %v1419_v5 = vadd.f32 %v2487_v6, %v1418_v2 }
 0x290   : > { %1621 = vmatpush.bf16.xpose.msrb.mxu3 %v2501_v12 }
 0x291   : > { %v1264_v13 = vpack.c.bf16 %v1223_v0, %v1222_v3  ;;  %v1538_v15 = vmax.f32 %v1419_v5, 0.0 }
 0x293   : > { %1460 = vmatmul.bf16.gmra.mxu2 %v1264_v13  ;;  %v2626_v17 = vpack.c.bf16 %v1538_v15, %v1537_v48 }
 0x294   : > { %v1133_v18 = vpop.f32.mrf.mxu1 }
 0x295   : > { %v1134_v23 = vadd.f32 %v2631_v37, %v1133_v18 }
 0x296   : > { %v1421_v55 = vpop.f32.mrf.mxu2 }
 0x297   : > { %1172 = vmatmul.bf16.gmra.mxu3 %v940_v22  ;;  %v1422_v12 = vadd.f32 %v2487_v6, %v1421_v55  ;;  %v1224_v28 = vmax.f32 %v1134_v23, 0.0 }
 0x299   : > { %v1539_v31 = vmax.f32 %v1422_v12, 0.0 }
 0x29c   : > { %v1135_v24 = vpop.f32.mrf.mxu1 }
 0x29d   : > { %v1136_v26 = vadd.f32 %v2631_v37, %v1135_v24 }
 0x29e   : > { %v1423_v27 = vpop.f32.mrf.mxu2 }
 0x29f   : > { %v1225_v29 = vmax.f32 %v1136_v26, 0.0  ;;  %v1424_v30 = vadd.f32 %v2487_v6, %v1423_v27 }
 0x2a1   : > { %v1265_v32 = vpack.c.bf16 %v1225_v29, %v1224_v28  ;;  %v1540_v14 = vmax.f32 %v1424_v30, 0.0 }
 0x2a3   : > { %1465 = vmatmul.bf16.gmra.mxu2 %v1265_v32  ;;  %v2637_v16 = vpack.c.bf16 %v1540_v14, %v1539_v31 }
 0x2a4   : > { %v1138_v34 = vpop.f32.mrf.mxu1 }
 0x2a5   : > { %v1139_v39 = vadd.f32 %v2631_v37, %v1138_v34 }
 0x2a6   : > { %v1426_v35 = vpop.f32.mrf.mxu2 }
 0x2a7   : > { %v1226_v42 = vmax.f32 %v1139_v39, 0.0  ;;  %v1427_v12 = vadd.f32 %v2487_v6, %v1426_v35 }
 0x2a9   : > { %v1541_v32 = vmax.f32 %v1427_v12, 0.0 }
 0x2ac   : > { %v1140_v19 = vpop.f32.mrf.mxu1 }
 0x2ad   : > { %v1141_v40 = vadd.f32 %v2631_v37, %v1140_v19 }
 0x2ae   : > { %v1428_v21 = vpop.f32.mrf.mxu2 }
 0x2af   : > { %v1227_v43 = vmax.f32 %v1141_v40, 0.0  ;;  %v1429_v22 = vadd.f32 %v2487_v6, %v1428_v21 }
 0x2b1   : > { %v1266_v44 = vpack.c.bf16 %v1227_v43, %v1226_v42  ;;  %v1542_v29 = vmax.f32 %v1429_v22, 0.0 }
 0x2b3   : > { %1470 = vmatmul.bf16.gmra.mxu2 %v1266_v44  ;;  %v1590_v39 = vpack.c.bf16 %v1542_v29, %v1541_v32  ;;  %v2687_v29 = vld [vmem:[%s2770_s7] sm:$0x3] }
 0x2b4   : > { %v1143_v53 = vpop.f32.mrf.mxu1 }
 0x2b5   : > { %v1144_v46 = vadd.f32 %v2631_v37, %v1143_v53 }
 0x2b6   : > { %v1431_v45 = vpop.f32.mrf.mxu2 }
 0x2b7   : > { %v1432_v49 = vadd.f32 %v2487_v6, %v1431_v45  ;;  %v1228_v20 = vmax.f32 %v1144_v46, 0.0 }
 0x2b9   : > { %v1543_v52 = vmax.f32 %v1432_v49, 0.0 }
 0x2bc   : > { %v1145_v47 = vpop.f32.mrf.mxu1 }
 0x2bd   : > { %v1146_v36 = vadd.f32 %v2631_v37, %v1145_v47 }
 0x2be   : > { %v1433_v50 = vpop.f32.mrf.mxu2 }
 0x2bf   : > { %v1229_v33 = vmax.f32 %v1146_v36, 0.0  ;;  %v1434_v51 = vadd.f32 %v2487_v6, %v1433_v50 }
 0x2c1   : > { %v1267_v54 = vpack.c.bf16 %v1229_v33, %v1228_v20  ;;  %v1544_v56 = vmax.f32 %v1434_v51, 0.0 }
 0x2c3   : > { %v2645_v57 = vpack.c.bf16 %v1544_v56, %v1543_v52  ;;  %1475 = vmatmul.bf16.gmra.mxu2 %v1267_v54 }
 0x2c4   : > { %v1148_v58 = vpop.f32.mrf.mxu1 }
 0x2c5   : > { %v1149_v59 = vadd.f32 %v2631_v37, %v1148_v58 }
 0x2c6   : > { %v1436_v8 = vpop.f32.mrf.mxu2 }
 0x2c7   : > { %v1437_v61 = vadd.f32 %v2487_v6, %v1436_v8  ;;  %v1230_v63 = vmax.f32 %v1149_v59, 0.0 }
 0x2c9   : > { %v1545_v3 = vmax.f32 %v1437_v61, 0.0 }
 0x2cc   : > { %v1150_v60 = vpop.f32.mrf.mxu1 }
 0x2cd   : > { %v1151_v9 = vadd.f32 %v2631_v37, %v1150_v60 }
 0x2ce   : > { %v1438_v62 = vpop.f32.mrf.mxu2 }
 0x2cf   : > { %v1231_v1 = vmax.f32 %v1151_v9, 0.0  ;;  %v1439_v2 = vadd.f32 %v2487_v6, %v1438_v62 }
 0x2d1   : > { %v1268_v0 = vpack.c.bf16 %v1231_v1, %v1230_v63  ;;  %v1546_v5 = vmax.f32 %v1439_v2, 0.0 }
 0x2d3   : > { %v2651_v4 = vpack.c.bf16 %v1546_v5, %v1545_v3  ;;  %1480 = vmatmul.bf16.gmra.mxu2 %v1268_v0 }
 0x2d6   : > { %v1441_v48 = vpop.f32.mrf.mxu2 }
 0x2d7   : > { %v1442_v13 = vadd.f32 %v2487_v6, %v1441_v48 }
 0x2d9   : > { %v1547_v55 = vmax.f32 %v1442_v13, 0.0 }
 0x2da   : > { %v1153_v7 = vpop.f32.mrf.mxu3 }
 0x2db   : > { %v1154_v23 = vadd.f32 %v2631_v37, %v1153_v7 }
 0x2dd   : > { %v1232_v30 = vmax.f32 %v1154_v23, 0.0 }
 0x2de   : > { %v1443_v15 = vpop.f32.mrf.mxu2 }
 0x2df   : > { %v1444_v18 = vadd.f32 %v2487_v6, %v1443_v15 }
 0x2e1   : > { %v1548_v24 = vmax.f32 %v1444_v18, 0.0 }
 0x2e2   : > { %v1155_v26 = vpop.f32.mrf.mxu3 }
 0x2e3   : > { %v2658_v27 = vpack.c.bf16 %v1548_v24, %v1547_v55  ;;  %v1156_v28 = vadd.f32 %v2631_v37, %v1155_v26 }
 0x2e5   : > { %v1233_v31 = vmax.f32 %v1156_v28, 0.0 }
 0x2e6   : > { %v1446_v14 = vpop.f32.mrf.mxu2 }
 0x2e7   : > { %v1269_v34 = vpack.c.bf16 %v1233_v31, %v1232_v30  ;;  %v1447_v40 = vadd.f32 %v2487_v6, %v1446_v14 }
 0x2e9   : > { %1485 = vmatmul.bf16.vlgmr.msra.gmra.mxu3 %v1269_v34  ;;  %v1549_v42 = vmax.f32 %v1447_v40, 0.0 }
 0x2ea   : > { %1627 = vmatpush.bf16.xpose.msra.mxu3 %v1590_v39  ;;  %v1158_v19 = vpop.f32.mrf.mxu3 }
 0x2eb   : > { %v1159_v43 = vadd.f32 %v2631_v37, %v1158_v19 }
 0x2ed   : > { %v1234_v47 = vmax.f32 %v1159_v43, 0.0  ;;  %v2179_v43 = vmov 0  }
 0x2ee   : > { %v1448_v21 = vpop.f32.mrf.mxu2  ;;  %2108 = vset.pattern.permute.xlu0 %v2179_v43 }
 0x2ef   : > { %v1449_v35 = vadd.f32 %v2487_v6, %v1448_v21 }
 0x2f1   : > { %v1550_v44 = vmax.f32 %v1449_v35, 0.0 }
 0x2f2   : > { %1628 = vmatpush.bf16.xpose.msra.mxu3 %v2637_v16  ;;  %v1160_v53 = vpop.f32.mrf.mxu3 }
 0x2f3   : > { %v2665_v45 = vpack.c.bf16 %v1550_v44, %v1549_v42  ;;  %v1161_v46 = vadd.f32 %v2631_v37, %v1160_v53  ;;  %v1608_v42 = vld [vmem:[%s2771_s8] sm:$0xf] }
 0x2f4   : > { %1611 = vperm.xlu0 %2108, %v1608_v42  }
 0x2f5   : > { %v1235_v49 = vmax.f32 %v1161_v46, 0.0 }
 0x2f6   : > { %v1451_v36 = vpop.f32.mrf.mxu2 }
 0x2f7   : > { %v1270_v50 = vpack.c.bf16 %v1235_v49, %v1234_v47  ;;  %v1452_v33 = vadd.f32 %v2487_v6, %v1451_v36  ;;  %v2708_v49 = vld [vmem:[%s2769_s6] ss:$0 sm:$0xff] }
 0x2f9   : > { %1490 = vmatmul.bf16.gmra.mxu3 %v1270_v50  ;;  %v1551_v54 = vmax.f32 %v1452_v33, 0.0 }
 0x2fa   : > { %1629 = vmatpush.bf16.xpose.msra.mxu3 %v2626_v17  ;;  %v1163_v20 = vpop.f32.mrf.mxu3 }
 0x2fb   : > { %v1164_v16 = vadd.f32 %v2631_v37, %v1163_v20 }
 0x2fd   : > { %v1236_v60 = vmax.f32 %v1164_v16, 0.0 }
 0x2fe   : > { %v1453_v51 = vpop.f32.mrf.mxu2 }
 0x2ff   : > { %v1454_v52 = vadd.f32 %v2487_v6, %v1453_v51 }
 0x301   : > { %v1552_v56 = vmax.f32 %v1454_v52, 0.0 }
 0x302   : > { %1630 = vmatpush.bf16.xpose.msra.mxu3 %v2616_v25  ;;  %v1165_v58 = vpop.f32.mrf.mxu3 }
 0x303   : > { %v1595_v8 = vpack.c.bf16 %v1552_v56, %v1551_v54  ;;  %v1166_v59 = vadd.f32 %v2631_v37, %v1165_v58 }
 0x305   : > { %v1237_v61 = vmax.f32 %v1166_v59, 0.0 }
 0x306   : > { %v1456_v9 = vpop.f32.mrf.mxu2 }
 0x307   : > { %v1271_v17 = vpack.c.bf16 %v1237_v61, %v1236_v60  ;;  %v1457_v39 = vadd.f32 %v2487_v6, %v1456_v9 }
 0x309   : > { %1495 = vmatmul.bf16.gmra.mxu3 %v1271_v17  ;;  %v1553_v40 = vmax.f32 %v1457_v39, 0.0 }
 0x30a   : > { %1631 = vmatpush.bf16.xpose.msra.mxu3 %v2606_v38  ;;  %v1168_v62 = vpop.f32.mrf.mxu3 }
 0x30b   : > { %v1169_v1 = vadd.f32 %v2631_v37, %v1168_v62 }
 0x30d   : > { %v1238_v3 = vmax.f32 %v1169_v1, 0.0 }
 0x30e   : > { %v1458_v63 = vpop.f32.mrf.mxu2 }
 0x30f   : > { %v1459_v14 = vadd.f32 %v2487_v6, %v1458_v63 }
 0x311   : > { %v1554_v19 = vmax.f32 %v1459_v14, 0.0 }
 0x312   : > { %1632 = vmatpush.bf16.xpose.msra.mxu3 %v2596_v10  ;;  %v1170_v2 = vpop.f32.mrf.mxu3 }
 0x313   : > { %v1171_v25 = vadd.f32 %v2631_v37, %v1170_v2  ;;  %v1596_v21 = vpack.c.bf16 %v1554_v19, %v1553_v40 }
 0x315   : > { %v1239_v0 = vmax.f32 %v1171_v25, 0.0 }
 0x316   : > { %v1461_v5 = vpop.f32.mrf.mxu2 }
 0x317   : > { %v1272_v48 = vpack.c.bf16 %v1239_v0, %v1238_v3  ;;  %v1462_v30 = vadd.f32 %v2487_v6, %v1461_v5 }
 0x319   : > { %1500 = vmatmul.bf16.gmra.mxu3 %v1272_v48  ;;  %v1555_v32 = vmax.f32 %v1462_v30, 0.0 }
 0x31a   : > { %1633 = vmatpush.bf16.xpose.msra.mxu3 %v2579_v41  ;;  %v1173_v7 = vpop.f32.mrf.mxu3 }
 0x31b   : > { %v1174_v38 = vadd.f32 %v2631_v37, %v1173_v7 }
 0x31d   : > { %v1240_v10 = vmax.f32 %v1174_v38, 0.0 }
 0x31e   : > { %v1463_v13 = vpop.f32.mrf.mxu2 }
 0x322   : > { %1634 = vmatpush.bf16.xpose.msra.mxu3 %v2569_v11  ;;  %v1175_v15 = vpop.f32.mrf.mxu3  ;;  %v1464_v11 = vadd.f32 %v2487_v6, %v1463_v13 }
 0x323   : > { %v1176_v18 = vadd.f32 %v2631_v37, %v1175_v15 }
 0x324   : > { %v1556_v31 = vmax.f32 %v1464_v11, 0.0 }
 0x325   : > { %v1241_v22 = vmax.f32 %v1176_v18, 0.0 }
 0x326   : > { %v1466_v55 = vpop.f32.mrf.mxu2  ;;  %v1597_v34 = vpack.c.bf16 %v1556_v31, %v1555_v32 }
 0x327   : > { %v1273_v23 = vpack.c.bf16 %v1241_v22, %v1240_v10  ;;  %v1467_v26 = vadd.f32 %v2487_v6, %v1466_v55 }
 0x329   : > { %1505 = vmatmul.bf16.gmra.mxu3 %v1273_v23  ;;  %v1557_v28 = vmax.f32 %v1467_v26, 0.0 }
 0x32e   : > { %v1468_v24 = vpop.f32.mrf.mxu2 }
 0x32f   : > { %v1469_v12 = vadd.f32 %v2487_v6, %v1468_v24 }
 0x331   : > { %v1558_v41 = vmax.f32 %v1469_v12, 0.0 }
 0x333   : > { %v1598_v37 = vpack.c.bf16 %v1558_v41, %v1557_v28 }
 0x336   : > { %v1471_v16 = vpop.f32.mrf.mxu2 }
 0x337   : > { %v1472_v42 = vadd.f32 %v2708_v49, %v1471_v16 }
 0x339   : > { %1622 = vmatmul.bf16.vlgmr.msrb.gmra.mxu3 %v2687_v29 }
 0x33a   : > { %1640 = vmatpush.bf16.xpose.msrb.mxu3 %v1598_v37 }
 0x342   : > { %1641 = vmatpush.bf16.xpose.msrb.mxu3 %v1597_v34 }
 0x349   : > { %1635 = vmatmul.bf16.vlgmr.msra.gmra.mxu3 %v2687_v29 }
 0x34a   : > { %1642 = vmatpush.bf16.xpose.msrb.mxu3 %v1596_v21 }
 0x352   : > { %1643 = vmatpush.bf16.xpose.msrb.mxu3 %v1595_v8  ;;  %v1473_v8 = vpop.f32.mrf.mxu2 }
 0x353   : > { %v1474_v21 = vadd.f32 %v2708_v49, %v1473_v8 }
 0x355   : > { %v1560_v43 = vmax.f32 %v1474_v21, 0.0 }
 0x35a   : > { %1644 = vmatpush.bf16.xpose.msrb.mxu3 %v2665_v45  ;;  %v1476_v62 = vpop.f32.mrf.mxu2 }
 0x35b   : > { %v1477_v37 = vadd.f32 %v2708_v49, %v1476_v62 }
 0x35d   : > { %v1561_v19 = vmax.f32 %v1477_v37, 0.0 }
 0x362   : > { %1645 = vmatpush.bf16.xpose.msrb.mxu3 %v2658_v27  ;;  %v1478_v48 = vpop.f32.mrf.mxu2 }
 0x363   : > { %v1479_v28 = vadd.f32 %v2708_v49, %v1478_v48 }
 0x365   : > { %v1562_v34 = vmax.f32 %v1479_v28, 0.0 }
 0x366   : > { %v1612_v30 = vpop.permute.xlu0 %1611 }
 0x36a   : > { %1646 = vmatpush.bf16.xpose.msrb.mxu3 %v2651_v4  ;;  %v1481_v10 = vpop.f32.mrf.mxu2 }
 0x36b   : > { %v1482_v24 = vadd.f32 %v2708_v49, %v1481_v10 }
 0x36c   : > { %v1486_v35 = vpop.f32.mrf.mxu3 }
 0x36d   : > { %v1487_v44 = vadd.f32 %v2487_v6, %v1486_v35  ;;  %v1563_v41 = vmax.f32 %v1482_v24, 0.0  ;;  %v1600_v35 = vpack.c.bf16 %v1562_v34, %v1561_v19 }
 0x36f   : > { %v1565_v45 = vmax.f32 %v1487_v44, 0.0  ;;  %v1559_v44 = vmax.f32 %v1472_v42, 0.0 }
 0x372   : > { %1647 = vmatpush.bf16.xpose.msrb.mxu3 %v2645_v57  ;;  %v1483_v55 = vpop.f32.mrf.mxu2 }
 0x373   : > { %v1484_v23 = vadd.f32 %v2708_v49, %v1483_v55 }
 0x374   : > { %v1488_v53 = vpop.f32.mrf.mxu3 }
 0x375   : > { %v1489_v46 = vadd.f32 %v2487_v6, %v1488_v53  ;;  %v1564_v26 = vmax.f32 %v1484_v23, 0.0  ;;  %v1599_v53 = vpack.c.bf16 %v1560_v43, %v1559_v44 }
 0x377   : > { %v1566_v47 = vmax.f32 %v1489_v46, 0.0  ;;  %v1601_v11 = vpack.c.bf16 %v1564_v26, %v1563_v41 }
 0x379   : > { %v1602_v27 = vpack.c.bf16 %v1566_v47, %v1565_v45  ;;  %1648 = vmatmul.bf16.vlgmr.msrb.gmra.mxu3 %v2687_v29 }
 0x37c   : > { %v1491_v4 = vpop.f32.mrf.mxu3 }
 0x37d   : > { %v1492_v36 = vadd.f32 %v2708_v49, %v1491_v4 }
 0x37f   : > { %v1567_v20 = vmax.f32 %v1492_v36, 0.0 }
 0x384   : > { %v1493_v50 = vpop.f32.mrf.mxu3 }
 0x385   : > { %v1494_v57 = vadd.f32 %v2708_v49, %v1493_v50 }
 0x387   : > { %v1568_v33 = vmax.f32 %v1494_v57, 0.0 }
 0x389   : > { %v1603_v51 = vpack.c.bf16 %v1568_v33, %v1567_v20 }
 0x38c   : > { %v1496_v6 = vpop.f32.mrf.mxu3 }
 0x38d   : > { %v1497_v7 = vadd.f32 %v2708_v49, %v1496_v6 }
 0x38f   : > { %v1569_v38 = vmax.f32 %v1497_v7, 0.0 }
 0x394   : > { %v1498_v52 = vpop.f32.mrf.mxu3 }
 0x395   : > { %v1499_v0 = vadd.f32 %v2708_v49, %v1498_v52 }
 0x397   : > { %v1570_v13 = vmax.f32 %v1499_v0, 0.0 }
 0x399   : > { %v1604_v15 = vpack.c.bf16 %v1570_v13, %v1569_v38 }
 0x39c   : > { %v1501_v54 = vpop.f32.mrf.mxu3 }
 0x39d   : > { %v1502_v2 = vadd.f32 %v2708_v49, %v1501_v54 }
 0x39f   : > { %v1571_v3 = vmax.f32 %v1502_v2, 0.0 }
 0x3a4   : > { %v1503_v56 = vpop.f32.mrf.mxu3 }
 0x3a5   : > { %v1504_v63 = vadd.f32 %v2708_v49, %v1503_v56 }
 0x3a7   : > { %v1572_v25 = vmax.f32 %v1504_v63, 0.0 }
 0x3a9   : > { %v1605_v5 = vpack.c.bf16 %v1572_v25, %v1571_v3 }
 0x3ac   : > { %v1506_v58 = vpop.f32.mrf.mxu3 }
 0x3ad   : > { %v1507_v59 = vadd.f32 %v2708_v49, %v1506_v58 }
 0x3af   : > { %v1573_v9 = vmax.f32 %v1507_v59, 0.0 }
 0x3b4   : > { %v1508_v60 = vpop.f32.mrf.mxu3 }
 0x3b5   : > { %v1509_v61 = vadd.f32 %v2708_v49, %v1508_v60 }
 0x3b7   : > { %v1574_v17 = vmax.f32 %v1509_v61, 0.0 }
 0x3b9   : > { %v1606_v1 = vpack.c.bf16 %v1574_v17, %v1573_v9 }
 0x3bb   : > { %1653 = vmatpush.bf16.xpose.msra.mxu3 %v1606_v1 }
 0x3bc   : > { %v1623_v18 = vpop.f32.mrf.mxu3 }
 0x3bd   : > { %v1624_v32 = vadd.f32 %v1623_v18, %v1612_v30 }
 0x3c3   : > { %1654 = vmatpush.bf16.xpose.msra.mxu3 %v1605_v5 }
 0x3c4   : > { %v1625_v22 = vpop.f32.mrf.mxu3 }
 0x3cb   : > { %1655 = vmatpush.bf16.xpose.msra.mxu3 %v1604_v15 }
 0x3cc   : > { %v1636_v12 = vpop.f32.mrf.mxu3 }
 0x3cd   : > { %v1637_v14 = vadd.f32 %v1636_v12, %v1612_v30 }
 0x3cf   : > { %v1670_v39 = vrot.slane %v1637_v14, 4 }
 0x3d1   : > { %v1673_v40 = vsel %vm1672_vm1, %v1624_v32, %v1670_v39 }
 0x3d2   : > { %1677 = vst [vmem:[%s326_s29] sm:$0xff] %v1673_v40 }
 0x3d3   : > { %1656 = vmatpush.bf16.xpose.msra.mxu3 %v1603_v51 }
 0x3d4   : > { %v1638_v31 = vpop.f32.mrf.mxu3 }
 0x3db   : > { %1657 = vmatpush.bf16.xpose.msra.mxu3 %v1602_v27 }
 0x3e3   : > { %1658 = vmatpush.bf16.xpose.msra.mxu3 %v1601_v11 }
 0x3eb   : > { %1659 = vmatpush.bf16.xpose.msra.mxu3 %v1600_v35 }
 0x3f3   : > { %1660 = vmatpush.bf16.xpose.msra.mxu3 %v1599_v53 }
 0x3fa   : > { %1661 = vmatmul.bf16.vlgmr.msra.gmra.mxu3 %v2687_v29 }
 0x3fc   : > { %v1649_v46 = vpop.f32.mrf.mxu3 }
 0x3fd   : > { %v1650_v4 = vadd.f32 %v1649_v46, %v1612_v30 }
 0x404   : > { %v1651_v45 = vpop.f32.mrf.mxu3 }
 0x47d   : > { %v1662_v47 = vpop.f32.mrf.mxu3 }
 0x47e   : > { %v1663_v27 = vadd.f32 %v1662_v47, %v1612_v30 }
 0x480   : > { %v1671_v49 = vrot.slane %v1663_v27, 4 }
 0x482   : > { %v1674_v36 = vsel %vm1672_vm1, %v1650_v4, %v1671_v49 }
 0x483   : > { %1678 = vst [vmem:[%s326_s29 + $0x8] sm:$0xff] %v1674_v36 }
 0x484   : > { %2142 = shalt.err (!%p2139_p3)
}
 0x485   : > { %2068 = dma.vmem_to_hbm [thread:$0]  (%p2268_p5), %s1694_s27, 256, %s1696_s28, %s1680_s14   ;;  %v1664_v29 = vpop.f32.mrf.mxu3 }
 0x486 PF: > { %p2074_p4 = scmp.ge.s32.totalorder %s2177_s12, 2  ;;  %s1707_s21 = sand.u32 1, %s2165_s30  }
 0x487   : > { %s1708_s29 = scalar_lea.sflag [#allocation3], %s1707_s21 }
 0x488   : > { %p2071_p7 = pnand %p2074_p4, %p2272_p6 }
 0x48a   : > { %p2072_p8 = pneg %p2071_p7 }
 0x48c   : > { %2160 = dma.done.wait (%p2072_p8), %s1708_s29, 256  }
 0x48d   : > { %2162 = vsyncadd (%p2072_p8), %s1708_s29, 4294967040  ;;  %p19_p9 = scmp.ge.s32.totalorder %s2255_s15, 10   ;;  %s2775_s30 = smov %s2169_s10 }
 0x48e   : > { %s2776_s10 = smov %s2173_s11  ;;  %s2777_s11 = smov %s2266_s18 }
 0x48f   : > { %s2778_s12 = smov %s2255_s15  ;;  %21 = sbr.rel (!%p19_p9) target bundleno = 3 (0x3), region = 91 }
 0x494   :  { %1714 = vsyncpa [#allocation3], 1 }
 0x495   :  { %1716 = vsyncpa [#allocation3 + $0x1], 1 }

</bundles_post_ra>
